<compile_context>
chip_gen: v5e
topology: v5e:2x2
jax: 0.10.0
libtpu: 0.0.40
codegen_flags: <defaults>
</compile_context>

<pallas_src>
import math

import jax
import jax.numpy as jnp
from jax import lax
from jax.experimental import pallas as pl
from jax.experimental.pallas import tpu as pltpu

# ------------------------------ model config ---------------------------------
IN_CHANNELS = 8
HIDDEN = 32
NUM_HEADS = 2
HEADC = HIDDEN // NUM_HEADS        # 16
DIM_V = HEADC                      # 16
K_HOPS = 3
OUT_CHANNELS = 1
NUM_TIMESTEPS = 128
CST = 1e-5
EDGE_TILE = 128                    # edges per grid step in the edge head (lane-dense)

_VMEM = pl.BlockSpec(memory_space=pltpu.MemorySpace.VMEM)
_SMEM = pl.BlockSpec(memory_space=pltpu.MemorySpace.SMEM)
_VMEM_LIMIT = 32 * 1024 * 1024     # explicit scoped-VMEM limit (safe on v5e/v6e/v7x)


# ------------------------------ in-kernel math --------------------------------
def _sigmoid(x):
    return 1.0 / (1.0 + jnp.exp(-x))


def _silu(x):
    return x * _sigmoid(x)


# ------------------------------ node kernel -----------------------------------
def _node_kernel(
    gam_ref,                                     # SMEM [H, K+1] gamma table
    x_ref, temb_ref, p_ref,                      # data (VMEM); p_ref is bf16 [N, N]
    w_in_ref, b_in_ref,                          # input_trans
    w_t1_ref, b_t1_ref, w_t2_ref, b_t2_ref,      # time_emb MLP
    w_q_ref, b_q_ref, w_k_ref, b_k_ref,          # per-head [H, HIDDEN, HEADC] / [H, 1, HEADC]
    w_v_ref, b_v_ref,                            # per-head V extended with a ones column
    w_o_ref, b_o_ref,                            # multi_concat output linear (per head)
    hidden_ref,                                  # output [N, DIM_V]
):
    f32, bf16 = jnp.float32, jnp.bfloat16

    def dot(a, b):
        return jnp.dot(a, b, preferred_element_type=f32)

    def dot_t(a, b):   # a @ b.T without an explicit transpose
        return lax.dot_general(a, b, (((1,), (1,)), ((), ())),
                               preferred_element_type=f32)

    # ---- time-embedding MLP on the precomputed sinusoidal features
    t = temb_ref[...]
    t = _silu(dot(t, w_t1_ref[...]) + b_t1_ref[...])
    t_emb = dot(t, w_t2_ref[...]) + b_t2_ref[...]

    # ---- x = relu(input_trans(x) + t_emb)          (dropout p = 0)
    xh = jnp.maximum(dot(x_ref[...], w_in_ref[...]) + b_in_ref[...] + t_emb, 0.0)

    # ---- per-head Q/K/V projections (slice WEIGHTS per head, not activations)
    #      Q, K -> 1 + elu;  V is extended with a ones column so that
    #      rowsum(P^k o QK^T) rides along the numerator matmul for free.
    q_b, k_b, v1_b, acc = [], [], [], []
    for h in range(NUM_HEADS):
        qh = dot(xh, w_q_ref[h]) + b_q_ref[h]
        kh = dot(xh, w_k_ref[h]) + b_k_ref[h]
        vh1 = dot(xh, w_v_ref[h]) + b_v_ref[h]             # [N, DIM_V + 1]
        qh = jnp.where(qh > 0.0, qh + 1.0, jnp.exp(qh))    # 1 + elu (positive map)
        kh = jnp.where(kh > 0.0, kh + 1.0, jnp.exp(kh))
        q_b.append(qh.astype(bf16))                        # bf16 MXU operands
        k_b.append(kh.astype(bf16))
        v1_b.append(vh1.astype(bf16))
        acc.append(gam_ref[h, 0] * vh1[:, :DIM_V])         # hidden = hopwise[0] * V (f32)

    # ---- K-hop sub-tree attention with one running P^k (hop-outer, head-inner)
    #      H^(k) = (P^k o Q K^T) V ,  C^(k) = rowsum(P^k o Q K^T) + cst
    pk = p_ref[...].astype(f32)                             # P^1, f32 for VPU elementwise
    for hop in range(K_HOPS):
        for h in range(NUM_HEADS):
            s = dot_t(q_b[h], k_b[h])                       # [N, N] f32, bf16 MXU in
            a = (pk * s).astype(bf16)                       # P^(hop+1) o Q K^T
            r = dot(a, v1_b[h])                             # [N, DIM_V+1]: num | rowsum
            den = r[:, DIM_V:DIM_V + 1] + CST
            acc[h] = acc[h] + gam_ref[h, hop + 1] * (r[:, :DIM_V] / den)
        if hop + 1 < K_HOPS:
            pk = dot(p_ref[...], pk.astype(bf16))           # running power, bf16 MXU

    # ---- multi_concat output linear, folded per head (no lane concat needed)
    hid = b_o_ref[...]
    for h in range(NUM_HEADS):
        hid = hid + dot(acc[h], w_o_ref[h])
    hidden_ref[...] = hid


# ------------------------------ edge kernel -----------------------------------
def _edge_kernel(
    src_ref, dst_ref,                            # scalar-prefetched SMEM [E_pad] int32
    hid_ref,                                     # [N, DIM_V] VMEM (full block)
    w1s_ref, w1d_ref, b1_ref, w2_ref, b2_ref,    # EdgeRegressionHead params
    out_ref,                                     # lane-dense [OUT_CHANNELS, EDGE_TILE]
    src_buf, dst_buf,                            # VMEM scratch [EDGE_TILE, DIM_V]
):
    f32 = jnp.float32
    base = pl.program_id(0) * EDGE_TILE

    # index-based gather of hidden rows for this edge tile (no one-hot matmul)
    @pl.loop(0, EDGE_TILE)
    def _(e):
        src_buf[pl.ds(e, 1), :] = hid_ref[pl.ds(src_ref[base + e], 1), :]
        dst_buf[pl.ds(e, 1), :] = hid_ref[pl.ds(dst_ref[base + e], 1), :]

    eh = _silu(jnp.dot(src_buf[...], w1s_ref[...], preferred_element_type=f32)
               + jnp.dot(dst_buf[...], w1d_ref[...], preferred_element_type=f32)
               + b1_ref[...])
    # lane-dense logits [OUT_CHANNELS, EDGE_TILE] (contract DIM_V, edges on lanes)
    out_ref[...] = lax.dot_general(w2_ref[...], eh, (((0,), (1,)), ((), ())),
                                   preferred_element_type=f32) + b2_ref[...]


# ------------------------------- parameters -----------------------------------
def init_params(key):
    keys = iter(jax.random.split(key, 64))

    def lin(din, dout):
        s = 1.0 / math.sqrt(din)
        return {'w': jax.random.uniform(next(keys), (din, dout), jnp.float32, -s, s),
                'b': jax.random.uniform(next(keys), (1, dout), jnp.float32, -s, s)}

    return {
        'input_trans': lin(IN_CHANNELS, HIDDEN),
        'time_mlp': [lin(HIDDEN, 4 * HIDDEN), lin(4 * HIDDEN, HIDDEN)],
        'linQ': lin(HIDDEN, NUM_HEADS * HEADC),
        'linK': lin(HIDDEN, NUM_HEADS * HEADC),
        'linV': lin(HIDDEN, NUM_HEADS * DIM_V),
        'output': lin(NUM_HEADS * DIM_V, DIM_V),                 # multi_concat=True
        'hopwise': jnp.ones((K_HOPS + 1,), jnp.float32),         # ind_gamma, gamma_softmax
        'headwise': jnp.zeros((NUM_HEADS, K_HOPS), jnp.float32),
        'edge_head': [lin(2 * DIM_V, DIM_V), lin(DIM_V, OUT_CHANNELS)],
    }


def sinusoidal_pos_emb(t, dim, num_steps, rescale_steps=4000.0):
    x = t.astype(jnp.float32) / num_steps * rescale_steps
    half = dim // 2
    freq = jnp.exp(jnp.arange(half, dtype=jnp.float32) * -(math.log(10000.0) / (half - 1)))
    arg = x[:, None] * freq[None, :]
    return jnp.concatenate([jnp.sin(arg), jnp.cos(arg)], axis=-1)


# --------------------------- graph-constant precompute -------------------------
def precompute_graph(edge_index, num_nodes):
    """Dense column-normalized propagation matrix P (bf16), built once per graph.

    out[i] = sum_{e: col[e]=i} norm[e] * x[row[e]]  <=>  out = P @ x,
    with deg over `col` and norm = deg_inv[row]  (matches the reference propM).
    """
    row, col = edge_index[0], edge_index[1]
    deg = jnp.zeros((num_nodes,), jnp.float32).at[col].add(1.0)
    deg_inv = jnp.where(deg > 0.0, 1.0 / deg, 0.0)
    norm = deg_inv[row]
    p = jnp.zeros((num_nodes, num_nodes), jnp.float32).at[col, row].add(norm)
    return p.astype(jnp.bfloat16)


# --------------------------------- forward ------------------------------------
def mstagnn_forward(params, data, time_steps, p_norm=None):
    n = int(data['num_nodes'])
    if p_norm is None:                       # hoistable: graph-constant across calls
        p_norm = precompute_graph(data['edge_index'], n)

    temb = sinusoidal_pos_emb(time_steps, HIDDEN, NUM_TIMESTEPS)

    # gamma table [H, K+1]: col 0 = hopwise[0]; col k+1 = hopwise[k+1]*softmax(headwise)[h,k]
    layerwise = jax.nn.softmax(params['headwise'], axis=0)
    gam = jnp.concatenate(
        [jnp.full((NUM_HEADS, 1), params['hopwise'][0], jnp.float32),
         params['hopwise'][None, 1:] * layerwise], axis=1)

    # per-head weight slabs on a leading head axis (avoids activation lane-slicing)
    def split_w(w):
        return w.reshape(w.shape[0], NUM_HEADS, -1).transpose(1, 0, 2)

    def split_b(b):
        return b.reshape(NUM_HEADS, 1, -1)

    w_q, b_q = split_w(params['linQ']['w']), split_b(params['linQ']['b'])
    w_k, b_k = split_w(params['linK']['w']), split_b(params['linK']['b'])
    w_v, b_v = split_w(params['linV']['w']), split_b(params['linV']['b'])
    # extend V with a ones column: fuses the softmax denominator into the V matmul
    w_v1 = jnp.concatenate([w_v, jnp.zeros((NUM_HEADS, HIDDEN, 1), jnp.float32)], axis=2)
    b_v1 = jnp.concatenate([b_v, jnp.ones((NUM_HEADS, 1, 1), jnp.float32)], axis=2)
    w_o = params['output']['w'].reshape(NUM_HEADS, DIM_V, DIM_V)

    hidden = pl.pallas_call(
        _node_kernel,
        out_shape=jax.ShapeDtypeStruct((n, DIM_V), jnp.float32),
        in_specs=[_SMEM] + [_VMEM] * 17,
        out_specs=_VMEM,
        compiler_params=pltpu.CompilerParams(vmem_limit_bytes=_VMEM_LIMIT),
    )(gam, data['x'], temb, p_norm,
      params['input_trans']['w'], params['input_trans']['b'],
      params['time_mlp'][0]['w'], params['time_mlp'][0]['b'],
      params['time_mlp'][1]['w'], params['time_mlp'][1]['b'],
      w_q, b_q, w_k, b_k, w_v1, b_v1,
      w_o, params['output']['b'])

    # ---------------- edge regression head: parallel grid over edge tiles ----------
    src, dst = data['full_edge_index'][0], data['full_edge_index'][1]
    e = src.shape[0]
    e_pad = ((e + EDGE_TILE - 1) // EDGE_TILE) * EDGE_TILE
    pad = e_pad - e
    if pad:
        src = jnp.concatenate([src, jnp.zeros((pad,), src.dtype)])
        dst = jnp.concatenate([dst, jnp.zeros((pad,), dst.dtype)])

    w1 = params['edge_head'][0]['w']
    w1s, w1d = w1[:DIM_V], w1[DIM_V:]
    b1 = params['edge_head'][0]['b']
    w2 = params['edge_head'][1]['w']
    b2 = params['edge_head'][1]['b'].T                     # [OUT_CHANNELS, 1]

    n_tiles = e_pad // EDGE_TILE
    logits_t = pl.pallas_call(
        _edge_kernel,
        out_shape=jax.ShapeDtypeStruct((OUT_CHANNELS, e_pad), jnp.float32),
        grid_spec=pltpu.PrefetchScalarGridSpec(
            num_scalar_prefetch=2,
            grid=(n_tiles,),
            in_specs=[
                pl.BlockSpec((n, DIM_V), lambda i, s, d: (0, 0)),
                pl.BlockSpec((DIM_V, DIM_V), lambda i, s, d: (0, 0)),
                pl.BlockSpec((DIM_V, DIM_V), lambda i, s, d: (0, 0)),
                pl.BlockSpec((1, DIM_V), lambda i, s, d: (0, 0)),
                pl.BlockSpec((DIM_V, OUT_CHANNELS), lambda i, s, d: (0, 0)),
                pl.BlockSpec((OUT_CHANNELS, 1), lambda i, s, d: (0, 0)),
            ],
            out_specs=pl.BlockSpec((OUT_CHANNELS, EDGE_TILE), lambda i, s, d: (0, i)),
            scratch_shapes=[pltpu.VMEM((EDGE_TILE, DIM_V), jnp.float32),
                            pltpu.VMEM((EDGE_TILE, DIM_V), jnp.float32)],
        ),
        compiler_params=pltpu.CompilerParams(
            dimension_semantics=("parallel",),
            vmem_limit_bytes=_VMEM_LIMIT),
    )(src.astype(jnp.int32), dst.astype(jnp.int32),
      hidden, w1s, w1d, b1, w2, b2)

    edge_logits = logits_t[:, :e].T                        # back to [E, OUT_CHANNELS]
    return edge_logits, [hidden]


# ----------------------------------- main --------------------------------------
if __name__ == "__main__":
    key = jax.random.PRNGKey(0)
    pkey, xkey, tkey = jax.random.split(key, 3)
    params = init_params(pkey)

    G, NPG = 2, 8
    N = G * NPG

    # message-passing graph: bidirectional ring per batch element
    src_l, dst_l = [], []
    for g in range(G):
        base = g * NPG
        for i in range(NPG):
            j = (i + 1) % NPG
            src_l += [base + i, base + j]
            dst_l += [base + j, base + i]
    edge_index = jnp.array([src_l, dst_l], dtype=jnp.int32)

    # full_edge_index: all ordered pairs i != j within each graph
    fr, fc = [], []
    for g in range(G):
        base = g * NPG
        for i in range(NPG):
            for j in range(NPG):
                if i != j:
                    fr.append(base + i)
                    fc.append(base + j)
    full_edge_index = jnp.array([fr, fc], dtype=jnp.int32)

    data = {
        'x': jax.random.normal(xkey, (N, IN_CHANNELS), jnp.float32),
        'edge_index': edge_index,
        'full_edge_index': full_edge_index,
        'num_nodes': N,
    }
    time_steps = jax.random.randint(tkey, (N,), 0, NUM_TIMESTEPS).astype(jnp.float32)

    # graph-constant preprocessing hoisted out of the per-step forward
    p_norm = precompute_graph(edge_index, N)

    edge_logits, aux = mstagnn_forward(params, data, time_steps, p_norm=p_norm)
    jax.block_until_ready((edge_logits, aux))
    assert edge_logits.shape == (full_edge_index.shape[1], OUT_CHANNELS)
    assert aux[0].shape == (N, DIM_V)
    print("KERNEL_OK")
</pallas_src>

<mosaic_0001>
module attributes {stable_mosaic.version = 11 : i64} {
  func.func @_node_kernel(%arg0: memref<2x4xf32, #tpu.memory_space<smem>>, %arg1: memref<16x8xf32, #tpu.memory_space<vmem>>, %arg2: memref<16x32xf32, #tpu.memory_space<vmem>>, %arg3: memref<16x16xbf16, #tpu.memory_space<vmem>>, %arg4: memref<8x32xf32, #tpu.memory_space<vmem>>, %arg5: memref<1x32xf32, #tpu.memory_space<vmem>>, %arg6: memref<32x128xf32, #tpu.memory_space<vmem>>, %arg7: memref<1x128xf32, #tpu.memory_space<vmem>>, %arg8: memref<128x32xf32, #tpu.memory_space<vmem>>, %arg9: memref<1x32xf32, #tpu.memory_space<vmem>>, %arg10: memref<2x32x16xf32, #tpu.memory_space<vmem>>, %arg11: memref<2x1x16xf32, #tpu.memory_space<vmem>>, %arg12: memref<2x32x16xf32, #tpu.memory_space<vmem>>, %arg13: memref<2x1x16xf32, #tpu.memory_space<vmem>>, %arg14: memref<2x32x17xf32, #tpu.memory_space<vmem>>, %arg15: memref<2x1x17xf32, #tpu.memory_space<vmem>>, %arg16: memref<2x16x16xf32, #tpu.memory_space<vmem>>, %arg17: memref<1x16xf32, #tpu.memory_space<vmem>>, %arg18: memref<16x16xf32, #tpu.memory_space<vmem>>) attributes {dimension_semantics = [], scalar_prefetch = 0 : i64, scratch_operands = 0 : i64, tpu.core_type = #tpu.core_type<tc>} {
    %c0 = arith.constant 0 : index
    %c0_0 = arith.constant 0 : index
    %0 = vector.load %arg2[%c0, %c0_0] : memref<16x32xf32, #tpu.memory_space<vmem>>, vector<16x32xf32>
    %c0_1 = arith.constant 0 : index
    %c0_2 = arith.constant 0 : index
    %1 = vector.load %arg6[%c0_1, %c0_2] : memref<32x128xf32, #tpu.memory_space<vmem>>, vector<32x128xf32>
    %cst = arith.constant dense<0.000000e+00> : vector<16x128xf32>
    %2 = tpu.matmul %0, %1, %cst {dimension_numbers = #tpu.dot_dimension_numbers<[1], [0], [0], [1], [0, 0, 1, 1], [], []>} : vector<16x32xf32>, vector<32x128xf32>, vector<16x128xf32> -> vector<16x128xf32>
    %c0_3 = arith.constant 0 : index
    %c0_4 = arith.constant 0 : index
    %3 = vector.load %arg7[%c0_3, %c0_4] : memref<1x128xf32, #tpu.memory_space<vmem>>, vector<1x128xf32>
    %4 = vector.broadcast %3 : vector<1x128xf32> to vector<16x128xf32>
    %5 = arith.addf %2, %4 : vector<16x128xf32>
    %cst_5 = arith.constant 0.000000e+00 : f32
    %6 = vector.broadcast %cst_5 : f32 to vector<16x128xf32>
    %7 = arith.subf %6, %5 : vector<16x128xf32>
    %8 = math.exp %7 : vector<16x128xf32>
    %cst_6 = arith.constant 1.000000e+00 : f32
    %9 = vector.broadcast %cst_6 : f32 to vector<16x128xf32>
    %10 = arith.addf %9, %8 : vector<16x128xf32>
    %cst_7 = arith.constant 1.000000e+00 : f32
    %11 = vector.broadcast %cst_7 : f32 to vector<16x128xf32>
    %12 = arith.divf %11, %10 : vector<16x128xf32>
    %13 = arith.mulf %5, %12 : vector<16x128xf32>
    %c0_8 = arith.constant 0 : index
    %c0_9 = arith.constant 0 : index
    %14 = vector.load %arg8[%c0_8, %c0_9] : memref<128x32xf32, #tpu.memory_space<vmem>>, vector<128x32xf32>
    %cst_10 = arith.constant dense<0.000000e+00> : vector<16x32xf32>
    %15 = tpu.matmul %13, %14, %cst_10 {dimension_numbers = #tpu.dot_dimension_numbers<[1], [0], [0], [1], [0, 0, 1, 1], [], []>} : vector<16x128xf32>, vector<128x32xf32>, vector<16x32xf32> -> vector<16x32xf32>
    %c0_11 = arith.constant 0 : index
    %c0_12 = arith.constant 0 : index
    %16 = vector.load %arg9[%c0_11, %c0_12] : memref<1x32xf32, #tpu.memory_space<vmem>>, vector<1x32xf32>
    %17 = vector.broadcast %16 : vector<1x32xf32> to vector<16x32xf32>
    %18 = arith.addf %15, %17 : vector<16x32xf32>
    %c0_13 = arith.constant 0 : index
    %c0_14 = arith.constant 0 : index
    %19 = vector.load %arg1[%c0_13, %c0_14] : memref<16x8xf32, #tpu.memory_space<vmem>>, vector<16x8xf32>
    %c0_15 = arith.constant 0 : index
    %c0_16 = arith.constant 0 : index
    %20 = vector.load %arg4[%c0_15, %c0_16] : memref<8x32xf32, #tpu.memory_space<vmem>>, vector<8x32xf32>
    %cst_17 = arith.constant dense<0.000000e+00> : vector<16x32xf32>
    %21 = tpu.matmul %19, %20, %cst_17 {dimension_numbers = #tpu.dot_dimension_numbers<[1], [0], [0], [1], [0, 0, 1, 1], [], []>} : vector<16x8xf32>, vector<8x32xf32>, vector<16x32xf32> -> vector<16x32xf32>
    %c0_18 = arith.constant 0 : index
    %c0_19 = arith.constant 0 : index
    %22 = vector.load %arg5[%c0_18, %c0_19] : memref<1x32xf32, #tpu.memory_space<vmem>>, vector<1x32xf32>
    %23 = vector.broadcast %22 : vector<1x32xf32> to vector<16x32xf32>
    %24 = arith.addf %21, %23 : vector<16x32xf32>
    %25 = arith.addf %24, %18 : vector<16x32xf32>
    %cst_20 = arith.constant 0.000000e+00 : f32
    %26 = vector.broadcast %cst_20 : f32 to vector<16x32xf32>
    %27 = arith.maximumf %25, %26 : vector<16x32xf32>
    %c0_21 = arith.constant 0 : index
    %c0_22 = arith.constant 0 : index
    %c0_23 = arith.constant 0 : index
    %28 = vector.load %arg10[%c0_21, %c0_22, %c0_23] : memref<2x32x16xf32, #tpu.memory_space<vmem>>, vector<1x32x16xf32>
    %29 = vector.shape_cast %28 : vector<1x32x16xf32> to vector<32x16xf32>
    %cst_24 = arith.constant dense<0.000000e+00> : vector<16x16xf32>
    %30 = tpu.matmul %27, %29, %cst_24 {dimension_numbers = #tpu.dot_dimension_numbers<[1], [0], [0], [1], [0, 0, 1, 1], [], []>} : vector<16x32xf32>, vector<32x16xf32>, vector<16x16xf32> -> vector<16x16xf32>
    %c0_25 = arith.constant 0 : index
    %c0_26 = arith.constant 0 : index
    %c0_27 = arith.constant 0 : index
    %31 = vector.load %arg11[%c0_25, %c0_26, %c0_27] : memref<2x1x16xf32, #tpu.memory_space<vmem>>, vector<1x1x16xf32>
    %32 = vector.shape_cast %31 : vector<1x1x16xf32> to vector<1x16xf32>
    %33 = vector.broadcast %32 : vector<1x16xf32> to vector<16x16xf32>
    %34 = arith.addf %30, %33 : vector<16x16xf32>
    %c0_28 = arith.constant 0 : index
    %c0_29 = arith.constant 0 : index
    %c0_30 = arith.constant 0 : index
    %35 = vector.load %arg12[%c0_28, %c0_29, %c0_30] : memref<2x32x16xf32, #tpu.memory_space<vmem>>, vector<1x32x16xf32>
    %36 = vector.shape_cast %35 : vector<1x32x16xf32> to vector<32x16xf32>
    %cst_31 = arith.constant dense<0.000000e+00> : vector<16x16xf32>
    %37 = tpu.matmul %27, %36, %cst_31 {dimension_numbers = #tpu.dot_dimension_numbers<[1], [0], [0], [1], [0, 0, 1, 1], [], []>} : vector<16x32xf32>, vector<32x16xf32>, vector<16x16xf32> -> vector<16x16xf32>
    %c0_32 = arith.constant 0 : index
    %c0_33 = arith.constant 0 : index
    %c0_34 = arith.constant 0 : index
    %38 = vector.load %arg13[%c0_32, %c0_33, %c0_34] : memref<2x1x16xf32, #tpu.memory_space<vmem>>, vector<1x1x16xf32>
    %39 = vector.shape_cast %38 : vector<1x1x16xf32> to vector<1x16xf32>
    %40 = vector.broadcast %39 : vector<1x16xf32> to vector<16x16xf32>
    %41 = arith.addf %37, %40 : vector<16x16xf32>
    %c0_35 = arith.constant 0 : index
    %c0_36 = arith.constant 0 : index
    %c0_37 = arith.constant 0 : index
    %42 = vector.load %arg14[%c0_35, %c0_36, %c0_37] : memref<2x32x17xf32, #tpu.memory_space<vmem>>, vector<1x32x17xf32>
    %43 = vector.shape_cast %42 : vector<1x32x17xf32> to vector<32x17xf32>
    %cst_38 = arith.constant dense<0.000000e+00> : vector<16x17xf32>
    %44 = tpu.matmul %27, %43, %cst_38 {dimension_numbers = #tpu.dot_dimension_numbers<[1], [0], [0], [1], [0, 0, 1, 1], [], []>} : vector<16x32xf32>, vector<32x17xf32>, vector<16x17xf32> -> vector<16x17xf32>
    %c0_39 = arith.constant 0 : index
    %c0_40 = arith.constant 0 : index
    %c0_41 = arith.constant 0 : index
    %45 = vector.load %arg15[%c0_39, %c0_40, %c0_41] : memref<2x1x17xf32, #tpu.memory_space<vmem>>, vector<1x1x17xf32>
    %46 = vector.shape_cast %45 : vector<1x1x17xf32> to vector<1x17xf32>
    %47 = vector.broadcast %46 : vector<1x17xf32> to vector<16x17xf32>
    %48 = arith.addf %44, %47 : vector<16x17xf32>
    %cst_42 = arith.constant 0.000000e+00 : f32
    %49 = vector.broadcast %cst_42 : f32 to vector<16x16xf32>
    %50 = arith.cmpf ogt, %34, %49 : vector<16x16xf32>
    %cst_43 = arith.constant 1.000000e+00 : f32
    %51 = vector.broadcast %cst_43 : f32 to vector<16x16xf32>
    %52 = arith.addf %34, %51 : vector<16x16xf32>
    %53 = math.exp %34 : vector<16x16xf32>
    %54 = arith.select %50, %52, %53 : vector<16x16xi1>, vector<16x16xf32>
    %cst_44 = arith.constant 0.000000e+00 : f32
    %55 = vector.broadcast %cst_44 : f32 to vector<16x16xf32>
    %56 = arith.cmpf ogt, %41, %55 : vector<16x16xf32>
    %cst_45 = arith.constant 1.000000e+00 : f32
    %57 = vector.broadcast %cst_45 : f32 to vector<16x16xf32>
    %58 = arith.addf %41, %57 : vector<16x16xf32>
    %59 = math.exp %41 : vector<16x16xf32>
    %60 = arith.select %56, %58, %59 : vector<16x16xi1>, vector<16x16xf32>
    %61 = arith.truncf %54 : vector<16x16xf32> to vector<16x16xbf16>
    %62 = arith.truncf %60 : vector<16x16xf32> to vector<16x16xbf16>
    %63 = arith.truncf %48 : vector<16x17xf32> to vector<16x17xbf16>
    %c0_46 = arith.constant 0 : index
    %c0_47 = arith.constant 0 : index
    %64 = memref.load %arg0[%c0_46, %c0_47] : memref<2x4xf32, #tpu.memory_space<smem>>
    %65 = vector.extract_strided_slice %48 {offsets = [0, 0], sizes = [16, 16], strides = [1, 1]} : vector<16x17xf32> to vector<16x16xf32>
    %66 = vector.broadcast %64 : f32 to vector<16x16xf32>
    %67 = arith.mulf %66, %65 : vector<16x16xf32>
    %c1 = arith.constant 1 : index
    %c0_48 = arith.constant 0 : index
    %c0_49 = arith.constant 0 : index
    %68 = vector.load %arg10[%c1, %c0_48, %c0_49] : memref<2x32x16xf32, #tpu.memory_space<vmem>>, vector<1x32x16xf32>
    %69 = vector.shape_cast %68 : vector<1x32x16xf32> to vector<32x16xf32>
    %cst_50 = arith.constant dense<0.000000e+00> : vector<16x16xf32>
    %70 = tpu.matmul %27, %69, %cst_50 {dimension_numbers = #tpu.dot_dimension_numbers<[1], [0], [0], [1], [0, 0, 1, 1], [], []>} : vector<16x32xf32>, vector<32x16xf32>, vector<16x16xf32> -> vector<16x16xf32>
    %c1_51 = arith.constant 1 : index
    %c0_52 = arith.constant 0 : index
    %c0_53 = arith.constant 0 : index
    %71 = vector.load %arg11[%c1_51, %c0_52, %c0_53] : memref<2x1x16xf32, #tpu.memory_space<vmem>>, vector<1x1x16xf32>
    %72 = vector.shape_cast %71 : vector<1x1x16xf32> to vector<1x16xf32>
    %73 = vector.broadcast %72 : vector<1x16xf32> to vector<16x16xf32>
    %74 = arith.addf %70, %73 : vector<16x16xf32>
    %c1_54 = arith.constant 1 : index
    %c0_55 = arith.constant 0 : index
    %c0_56 = arith.constant 0 : index
    %75 = vector.load %arg12[%c1_54, %c0_55, %c0_56] : memref<2x32x16xf32, #tpu.memory_space<vmem>>, vector<1x32x16xf32>
    %76 = vector.shape_cast %75 : vector<1x32x16xf32> to vector<32x16xf32>
    %cst_57 = arith.constant dense<0.000000e+00> : vector<16x16xf32>
    %77 = tpu.matmul %27, %76, %cst_57 {dimension_numbers = #tpu.dot_dimension_numbers<[1], [0], [0], [1], [0, 0, 1, 1], [], []>} : vector<16x32xf32>, vector<32x16xf32>, vector<16x16xf32> -> vector<16x16xf32>
    %c1_58 = arith.constant 1 : index
    %c0_59 = arith.constant 0 : index
    %c0_60 = arith.constant 0 : index
    %78 = vector.load %arg13[%c1_58, %c0_59, %c0_60] : memref<2x1x16xf32, #tpu.memory_space<vmem>>, vector<1x1x16xf32>
    %79 = vector.shape_cast %78 : vector<1x1x16xf32> to vector<1x16xf32>
    %80 = vector.broadcast %79 : vector<1x16xf32> to vector<16x16xf32>
    %81 = arith.addf %77, %80 : vector<16x16xf32>
    %c1_61 = arith.constant 1 : index
    %c0_62 = arith.constant 0 : index
    %c0_63 = arith.constant 0 : index
    %82 = vector.load %arg14[%c1_61, %c0_62, %c0_63] : memref<2x32x17xf32, #tpu.memory_space<vmem>>, vector<1x32x17xf32>
    %83 = vector.shape_cast %82 : vector<1x32x17xf32> to vector<32x17xf32>
    %cst_64 = arith.constant dense<0.000000e+00> : vector<16x17xf32>
    %84 = tpu.matmul %27, %83, %cst_64 {dimension_numbers = #tpu.dot_dimension_numbers<[1], [0], [0], [1], [0, 0, 1, 1], [], []>} : vector<16x32xf32>, vector<32x17xf32>, vector<16x17xf32> -> vector<16x17xf32>
    %c1_65 = arith.constant 1 : index
    %c0_66 = arith.constant 0 : index
    %c0_67 = arith.constant 0 : index
    %85 = vector.load %arg15[%c1_65, %c0_66, %c0_67] : memref<2x1x17xf32, #tpu.memory_space<vmem>>, vector<1x1x17xf32>
    %86 = vector.shape_cast %85 : vector<1x1x17xf32> to vector<1x17xf32>
    %87 = vector.broadcast %86 : vector<1x17xf32> to vector<16x17xf32>
    %88 = arith.addf %84, %87 : vector<16x17xf32>
    %cst_68 = arith.constant 0.000000e+00 : f32
    %89 = vector.broadcast %cst_68 : f32 to vector<16x16xf32>
    %90 = arith.cmpf ogt, %74, %89 : vector<16x16xf32>
    %cst_69 = arith.constant 1.000000e+00 : f32
    %91 = vector.broadcast %cst_69 : f32 to vector<16x16xf32>
    %92 = arith.addf %74, %91 : vector<16x16xf32>
    %93 = math.exp %74 : vector<16x16xf32>
    %94 = arith.select %90, %92, %93 : vector<16x16xi1>, vector<16x16xf32>
    %cst_70 = arith.constant 0.000000e+00 : f32
    %95 = vector.broadcast %cst_70 : f32 to vector<16x16xf32>
    %96 = arith.cmpf ogt, %81, %95 : vector<16x16xf32>
    %cst_71 = arith.constant 1.000000e+00 : f32
    %97 = vector.broadcast %cst_71 : f32 to vector<16x16xf32>
    %98 = arith.addf %81, %97 : vector<16x16xf32>
    %99 = math.exp %81 : vector<16x16xf32>
    %100 = arith.select %96, %98, %99 : vector<16x16xi1>, vector<16x16xf32>
    %101 = arith.truncf %94 : vector<16x16xf32> to vector<16x16xbf16>
    %102 = arith.truncf %100 : vector<16x16xf32> to vector<16x16xbf16>
    %103 = arith.truncf %88 : vector<16x17xf32> to vector<16x17xbf16>
    %c1_72 = arith.constant 1 : index
    %c0_73 = arith.constant 0 : index
    %104 = memref.load %arg0[%c1_72, %c0_73] : memref<2x4xf32, #tpu.memory_space<smem>>
    %105 = vector.extract_strided_slice %88 {offsets = [0, 0], sizes = [16, 16], strides = [1, 1]} : vector<16x17xf32> to vector<16x16xf32>
    %106 = vector.broadcast %104 : f32 to vector<16x16xf32>
    %107 = arith.mulf %106, %105 : vector<16x16xf32>
    %c0_74 = arith.constant 0 : index
    %c0_75 = arith.constant 0 : index
    %108 = vector.load %arg3[%c0_74, %c0_75] : memref<16x16xbf16, #tpu.memory_space<vmem>>, vector<16x16xbf16>
    %109 = arith.extf %108 : vector<16x16xbf16> to vector<16x16xf32>
    %cst_76 = arith.constant dense<0.000000e+00> : vector<16x16xf32>
    %110 = tpu.matmul %61, %62, %cst_76 {dimension_numbers = #tpu.dot_dimension_numbers<[1], [1], [0], [0], [0, 0, 1, 0], [], []>} : vector<16x16xbf16>, vector<16x16xbf16>, vector<16x16xf32> -> vector<16x16xf32>
    %111 = arith.mulf %109, %110 : vector<16x16xf32>
    %112 = arith.truncf %111 : vector<16x16xf32> to vector<16x16xbf16>
    %cst_77 = arith.constant dense<0.000000e+00> : vector<16x17xf32>
    %113 = tpu.matmul %112, %63, %cst_77 {dimension_numbers = #tpu.dot_dimension_numbers<[1], [0], [0], [1], [0, 0, 1, 1], [], []>} : vector<16x16xbf16>, vector<16x17xbf16>, vector<16x17xf32> -> vector<16x17xf32>
    %114 = vector.extract_strided_slice %113 {offsets = [0, 16], sizes = [16, 1], strides = [1, 1]} : vector<16x17xf32> to vector<16x1xf32>
    %cst_78 = arith.constant 9.99999974E-6 : f32
    %115 = vector.broadcast %cst_78 : f32 to vector<16x1xf32>
    %116 = arith.addf %114, %115 : vector<16x1xf32>
    %c0_79 = arith.constant 0 : index
    %c1_80 = arith.constant 1 : index
    %117 = memref.load %arg0[%c0_79, %c1_80] : memref<2x4xf32, #tpu.memory_space<smem>>
    %118 = vector.extract_strided_slice %113 {offsets = [0, 0], sizes = [16, 16], strides = [1, 1]} : vector<16x17xf32> to vector<16x16xf32>
    %119 = vector.broadcast %116 : vector<16x1xf32> to vector<16x16xf32>
    %120 = arith.divf %118, %119 : vector<16x16xf32>
    %121 = vector.broadcast %117 : f32 to vector<16x16xf32>
    %122 = arith.mulf %121, %120 : vector<16x16xf32>
    %123 = arith.addf %67, %122 : vector<16x16xf32>
    %cst_81 = arith.constant dense<0.000000e+00> : vector<16x16xf32>
    %124 = tpu.matmul %101, %102, %cst_81 {dimension_numbers = #tpu.dot_dimension_numbers<[1], [1], [0], [0], [0, 0, 1, 0], [], []>} : vector<16x16xbf16>, vector<16x16xbf16>, vector<16x16xf32> -> vector<16x16xf32>
    %125 = arith.mulf %109, %124 : vector<16x16xf32>
    %126 = arith.truncf %125 : vector<16x16xf32> to vector<16x16xbf16>
    %cst_82 = arith.constant dense<0.000000e+00> : vector<16x17xf32>
    %127 = tpu.matmul %126, %103, %cst_82 {dimension_numbers = #tpu.dot_dimension_numbers<[1], [0], [0], [1], [0, 0, 1, 1], [], []>} : vector<16x16xbf16>, vector<16x17xbf16>, vector<16x17xf32> -> vector<16x17xf32>
    %128 = vector.extract_strided_slice %127 {offsets = [0, 16], sizes = [16, 1], strides = [1, 1]} : vector<16x17xf32> to vector<16x1xf32>
    %cst_83 = arith.constant 9.99999974E-6 : f32
    %129 = vector.broadcast %cst_83 : f32 to vector<16x1xf32>
    %130 = arith.addf %128, %129 : vector<16x1xf32>
    %c1_84 = arith.constant 1 : index
    %c1_85 = arith.constant 1 : index
    %131 = memref.load %arg0[%c1_84, %c1_85] : memref<2x4xf32, #tpu.memory_space<smem>>
    %132 = vector.extract_strided_slice %127 {offsets = [0, 0], sizes = [16, 16], strides = [1, 1]} : vector<16x17xf32> to vector<16x16xf32>
    %133 = vector.broadcast %130 : vector<16x1xf32> to vector<16x16xf32>
    %134 = arith.divf %132, %133 : vector<16x16xf32>
    %135 = vector.broadcast %131 : f32 to vector<16x16xf32>
    %136 = arith.mulf %135, %134 : vector<16x16xf32>
    %137 = arith.addf %107, %136 : vector<16x16xf32>
    %c0_86 = arith.constant 0 : index
    %c0_87 = arith.constant 0 : index
    %138 = vector.load %arg3[%c0_86, %c0_87] : memref<16x16xbf16, #tpu.memory_space<vmem>>, vector<16x16xbf16>
    %139 = arith.truncf %109 : vector<16x16xf32> to vector<16x16xbf16>
    %cst_88 = arith.constant dense<0.000000e+00> : vector<16x16xf32>
    %140 = tpu.matmul %138, %139, %cst_88 {dimension_numbers = #tpu.dot_dimension_numbers<[1], [0], [0], [1], [0, 0, 1, 1], [], []>} : vector<16x16xbf16>, vector<16x16xbf16>, vector<16x16xf32> -> vector<16x16xf32>
    %cst_89 = arith.constant dense<0.000000e+00> : vector<16x16xf32>
    %141 = tpu.matmul %61, %62, %cst_89 {dimension_numbers = #tpu.dot_dimension_numbers<[1], [1], [0], [0], [0, 0, 1, 0], [], []>} : vector<16x16xbf16>, vector<16x16xbf16>, vector<16x16xf32> -> vector<16x16xf32>
    %142 = arith.mulf %140, %141 : vector<16x16xf32>
    %143 = arith.truncf %142 : vector<16x16xf32> to vector<16x16xbf16>
    %cst_90 = arith.constant dense<0.000000e+00> : vector<16x17xf32>
    %144 = tpu.matmul %143, %63, %cst_90 {dimension_numbers = #tpu.dot_dimension_numbers<[1], [0], [0], [1], [0, 0, 1, 1], [], []>} : vector<16x16xbf16>, vector<16x17xbf16>, vector<16x17xf32> -> vector<16x17xf32>
    %145 = vector.extract_strided_slice %144 {offsets = [0, 16], sizes = [16, 1], strides = [1, 1]} : vector<16x17xf32> to vector<16x1xf32>
    %cst_91 = arith.constant 9.99999974E-6 : f32
    %146 = vector.broadcast %cst_91 : f32 to vector<16x1xf32>
    %147 = arith.addf %145, %146 : vector<16x1xf32>
    %c0_92 = arith.constant 0 : index
    %c2 = arith.constant 2 : index
    %148 = memref.load %arg0[%c0_92, %c2] : memref<2x4xf32, #tpu.memory_space<smem>>
    %149 = vector.extract_strided_slice %144 {offsets = [0, 0], sizes = [16, 16], strides = [1, 1]} : vector<16x17xf32> to vector<16x16xf32>
    %150 = vector.broadcast %147 : vector<16x1xf32> to vector<16x16xf32>
    %151 = arith.divf %149, %150 : vector<16x16xf32>
    %152 = vector.broadcast %148 : f32 to vector<16x16xf32>
    %153 = arith.mulf %152, %151 : vector<16x16xf32>
    %154 = arith.addf %123, %153 : vector<16x16xf32>
    %cst_93 = arith.constant dense<0.000000e+00> : vector<16x16xf32>
    %155 = tpu.matmul %101, %102, %cst_93 {dimension_numbers = #tpu.dot_dimension_numbers<[1], [1], [0], [0], [0, 0, 1, 0], [], []>} : vector<16x16xbf16>, vector<16x16xbf16>, vector<16x16xf32> -> vector<16x16xf32>
    %156 = arith.mulf %140, %155 : vector<16x16xf32>
    %157 = arith.truncf %156 : vector<16x16xf32> to vector<16x16xbf16>
    %cst_94 = arith.constant dense<0.000000e+00> : vector<16x17xf32>
    %158 = tpu.matmul %157, %103, %cst_94 {dimension_numbers = #tpu.dot_dimension_numbers<[1], [0], [0], [1], [0, 0, 1, 1], [], []>} : vector<16x16xbf16>, vector<16x17xbf16>, vector<16x17xf32> -> vector<16x17xf32>
    %159 = vector.extract_strided_slice %158 {offsets = [0, 16], sizes = [16, 1], strides = [1, 1]} : vector<16x17xf32> to vector<16x1xf32>
    %cst_95 = arith.constant 9.99999974E-6 : f32
    %160 = vector.broadcast %cst_95 : f32 to vector<16x1xf32>
    %161 = arith.addf %159, %160 : vector<16x1xf32>
    %c1_96 = arith.constant 1 : index
    %c2_97 = arith.constant 2 : index
    %162 = memref.load %arg0[%c1_96, %c2_97] : memref<2x4xf32, #tpu.memory_space<smem>>
    %163 = vector.extract_strided_slice %158 {offsets = [0, 0], sizes = [16, 16], strides = [1, 1]} : vector<16x17xf32> to vector<16x16xf32>
    %164 = vector.broadcast %161 : vector<16x1xf32> to vector<16x16xf32>
    %165 = arith.divf %163, %164 : vector<16x16xf32>
    %166 = vector.broadcast %162 : f32 to vector<16x16xf32>
    %167 = arith.mulf %166, %165 : vector<16x16xf32>
    %168 = arith.addf %137, %167 : vector<16x16xf32>
    %c0_98 = arith.constant 0 : index
    %c0_99 = arith.constant 0 : index
    %169 = vector.load %arg3[%c0_98, %c0_99] : memref<16x16xbf16, #tpu.memory_space<vmem>>, vector<16x16xbf16>
    %170 = arith.truncf %140 : vector<16x16xf32> to vector<16x16xbf16>
    %cst_100 = arith.constant dense<0.000000e+00> : vector<16x16xf32>
    %171 = tpu.matmul %169, %170, %cst_100 {dimension_numbers = #tpu.dot_dimension_numbers<[1], [0], [0], [1], [0, 0, 1, 1], [], []>} : vector<16x16xbf16>, vector<16x16xbf16>, vector<16x16xf32> -> vector<16x16xf32>
    %cst_101 = arith.constant dense<0.000000e+00> : vector<16x16xf32>
    %172 = tpu.matmul %61, %62, %cst_101 {dimension_numbers = #tpu.dot_dimension_numbers<[1], [1], [0], [0], [0, 0, 1, 0], [], []>} : vector<16x16xbf16>, vector<16x16xbf16>, vector<16x16xf32> -> vector<16x16xf32>
    %173 = arith.mulf %171, %172 : vector<16x16xf32>
    %174 = arith.truncf %173 : vector<16x16xf32> to vector<16x16xbf16>
    %cst_102 = arith.constant dense<0.000000e+00> : vector<16x17xf32>
    %175 = tpu.matmul %174, %63, %cst_102 {dimension_numbers = #tpu.dot_dimension_numbers<[1], [0], [0], [1], [0, 0, 1, 1], [], []>} : vector<16x16xbf16>, vector<16x17xbf16>, vector<16x17xf32> -> vector<16x17xf32>
    %176 = vector.extract_strided_slice %175 {offsets = [0, 16], sizes = [16, 1], strides = [1, 1]} : vector<16x17xf32> to vector<16x1xf32>
    %cst_103 = arith.constant 9.99999974E-6 : f32
    %177 = vector.broadcast %cst_103 : f32 to vector<16x1xf32>
    %178 = arith.addf %176, %177 : vector<16x1xf32>
    %c0_104 = arith.constant 0 : index
    %c3 = arith.constant 3 : index
    %179 = memref.load %arg0[%c0_104, %c3] : memref<2x4xf32, #tpu.memory_space<smem>>
    %180 = vector.extract_strided_slice %175 {offsets = [0, 0], sizes = [16, 16], strides = [1, 1]} : vector<16x17xf32> to vector<16x16xf32>
    %181 = vector.broadcast %178 : vector<16x1xf32> to vector<16x16xf32>
    %182 = arith.divf %180, %181 : vector<16x16xf32>
    %183 = vector.broadcast %179 : f32 to vector<16x16xf32>
    %184 = arith.mulf %183, %182 : vector<16x16xf32>
    %185 = arith.addf %154, %184 : vector<16x16xf32>
    %cst_105 = arith.constant dense<0.000000e+00> : vector<16x16xf32>
    %186 = tpu.matmul %101, %102, %cst_105 {dimension_numbers = #tpu.dot_dimension_numbers<[1], [1], [0], [0], [0, 0, 1, 0], [], []>} : vector<16x16xbf16>, vector<16x16xbf16>, vector<16x16xf32> -> vector<16x16xf32>
    %187 = arith.mulf %171, %186 : vector<16x16xf32>
    %188 = arith.truncf %187 : vector<16x16xf32> to vector<16x16xbf16>
    %cst_106 = arith.constant dense<0.000000e+00> : vector<16x17xf32>
    %189 = tpu.matmul %188, %103, %cst_106 {dimension_numbers = #tpu.dot_dimension_numbers<[1], [0], [0], [1], [0, 0, 1, 1], [], []>} : vector<16x16xbf16>, vector<16x17xbf16>, vector<16x17xf32> -> vector<16x17xf32>
    %190 = vector.extract_strided_slice %189 {offsets = [0, 16], sizes = [16, 1], strides = [1, 1]} : vector<16x17xf32> to vector<16x1xf32>
    %cst_107 = arith.constant 9.99999974E-6 : f32
    %191 = vector.broadcast %cst_107 : f32 to vector<16x1xf32>
    %192 = arith.addf %190, %191 : vector<16x1xf32>
    %c1_108 = arith.constant 1 : index
    %c3_109 = arith.constant 3 : index
    %193 = memref.load %arg0[%c1_108, %c3_109] : memref<2x4xf32, #tpu.memory_space<smem>>
    %194 = vector.extract_strided_slice %189 {offsets = [0, 0], sizes = [16, 16], strides = [1, 1]} : vector<16x17xf32> to vector<16x16xf32>
    %195 = vector.broadcast %192 : vector<16x1xf32> to vector<16x16xf32>
    %196 = arith.divf %194, %195 : vector<16x16xf32>
    %197 = vector.broadcast %193 : f32 to vector<16x16xf32>
    %198 = arith.mulf %197, %196 : vector<16x16xf32>
    %199 = arith.addf %168, %198 : vector<16x16xf32>
    %c0_110 = arith.constant 0 : index
    %c0_111 = arith.constant 0 : index
    %200 = vector.load %arg17[%c0_110, %c0_111] : memref<1x16xf32, #tpu.memory_space<vmem>>, vector<1x16xf32>
    %c0_112 = arith.constant 0 : index
    %c0_113 = arith.constant 0 : index
    %c0_114 = arith.constant 0 : index
    %201 = vector.load %arg16[%c0_112, %c0_113, %c0_114] : memref<2x16x16xf32, #tpu.memory_space<vmem>>, vector<1x16x16xf32>
    %202 = vector.shape_cast %201 : vector<1x16x16xf32> to vector<16x16xf32>
    %cst_115 = arith.constant dense<0.000000e+00> : vector<16x16xf32>
    %203 = tpu.matmul %185, %202, %cst_115 {dimension_numbers = #tpu.dot_dimension_numbers<[1], [0], [0], [1], [0, 0, 1, 1], [], []>} : vector<16x16xf32>, vector<16x16xf32>, vector<16x16xf32> -> vector<16x16xf32>
    %204 = vector.broadcast %200 : vector<1x16xf32> to vector<16x16xf32>
    %205 = arith.addf %204, %203 : vector<16x16xf32>
    %c1_116 = arith.constant 1 : index
    %c0_117 = arith.constant 0 : index
    %c0_118 = arith.constant 0 : index
    %206 = vector.load %arg16[%c1_116, %c0_117, %c0_118] : memref<2x16x16xf32, #tpu.memory_space<vmem>>, vector<1x16x16xf32>
    %207 = vector.shape_cast %206 : vector<1x16x16xf32> to vector<16x16xf32>
    %cst_119 = arith.constant dense<0.000000e+00> : vector<16x16xf32>
    %208 = tpu.matmul %199, %207, %cst_119 {dimension_numbers = #tpu.dot_dimension_numbers<[1], [0], [0], [1], [0, 0, 1, 1], [], []>} : vector<16x16xf32>, vector<16x16xf32>, vector<16x16xf32> -> vector<16x16xf32>
    %209 = arith.addf %205, %208 : vector<16x16xf32>
    %c0_120 = arith.constant 0 : index
    %c0_121 = arith.constant 0 : index
    %210 = vector.load %arg18[%c0_120, %c0_121] : memref<16x16xf32, #tpu.memory_space<vmem>>, vector<16x16xf32>
    tpu.vector_store %arg18[%c0_120, %c0_121], %209 {strides = array<i32>} : memref<16x16xf32, #tpu.memory_space<vmem>>, vector<16x16xf32>,
    return
  }
}

</mosaic_0001>

<bundles_post_ra>
// kernel: tpu_custom_call.1
= control target key start
LH: loop header
LB: loop body
LE: loop exit
PB: predicated region body
PF: predicated region fallthrough
CT: control target
= control target key end

     0   :  { %s1840_s0 = inlined_call_operand.vmem [shape: f32[2,4], index: 0, kind: input, shape index: {}]   ;;  %s1841_s1 = inlined_call_operand.vmem [shape: f32[16,8], index: 1, kind: input, shape index: {}]   ;;  %s1842_s2 = inlined_call_operand.vmem [shape: f32[16,32], index: 2, kind: input, shape index: {}]   ;;  %s1843_s3 = inlined_call_operand.vmem [shape: bf16[16,16], index: 3, kind: input, shape index: {}]   ;;  %s1844_s4 = inlined_call_operand.vmem [shape: f32[8,32], index: 4, kind: input, shape index: {}]   ;;  %s1845_s5 = inlined_call_operand.vmem [shape: f32[1,32], index: 5, kind: input, shape index: {}]   ;;  %s1846_s6 = inlined_call_operand.vmem [shape: f32[32,128], index: 6, kind: input, shape index: {}]   ;;  %s1847_s7 = inlined_call_operand.vmem [shape: f32[1,128], index: 7, kind: input, shape index: {}]   ;;  %s1848_s8 = inlined_call_operand.vmem [shape: f32[128,32], index: 8, kind: input, shape index: {}]   ;;  %s1849_s9 = inlined_call_operand.vmem [shape: f32[1,32], index: 9, kind: input, shape index: {}]   ;;  %s1850_s10 = inlined_call_operand.vmem [shape: f32[2,32,16], index: 10, kind: input, shape index: {}]   ;;  %s1851_s11 = inlined_call_operand.vmem [shape: f32[2,1,16], index: 11, kind: input, shape index: {}]   ;;  %s1852_s12 = inlined_call_operand.vmem [shape: f32[2,32,16], index: 12, kind: input, shape index: {}]   ;;  %s1853_s13 = inlined_call_operand.vmem [shape: f32[2,1,16], index: 13, kind: input, shape index: {}]   ;;  %s1854_s14 = inlined_call_operand.vmem [shape: f32[2,32,17], index: 14, kind: input, shape index: {}]   ;;  %s1855_s15 = inlined_call_operand.vmem [shape: f32[2,1,17], index: 15, kind: input, shape index: {}]   ;;  %s1856_s16 = inlined_call_operand.vmem [shape: f32[2,16,16], index: 16, kind: input, shape index: {}]   ;;  %s1857_s17 = inlined_call_operand.vmem [shape: f32[1,16], index: 17, kind: input, shape index: {}]   ;;  %s1858_s18 = inlined_call_operand.hbm [shape: f32[16,16], index: 18, kind: output, shape index: {}]  }
   0x1   :  { %1861 = sst [smem:[#allocation8_spill]] %s1840_s0 }
   0x2   :  { %1862 = sst [smem:[#allocation9_spill]] %s1841_s1 }
   0x3   :  { %1863 = sst [smem:[#allocation10_spill]] %s1842_s2 }
   0x4   :  { %23 = vsyncpa [#allocation4], 0 }
   0x5   :  { %24 = vsyncpa [#allocation3], 0  ;;  %s1864_s29 = sld [smem:[#allocation8_spill]]  ;;  %s1242_s0 = smov [#allocation2]  }
   0xb   :  { %s30_s30 = sshll.u32 %s1864_s29, 4  ;;  %s31_s30 = int_to_ptr.vmem [resolvable:$true] %s30_s30 }
   0xc   :  { %33 = dma.vmem_to_smem %s31_s30, 32, %s1242_s0, [#allocation4]  }
   0xd   :  { %1238 = dma.done.wait [#allocation4], 32  }
   0xe   :  { %1239 = vsyncadd [#allocation4], 4294967264 }
   0xf   :  { %72 = sfence }
  0x10   :  { %v79_v0 = vld [vmem:[%s1846_s6 + $0x18] sm:$0xff]  ;;  %v78_v1 = vld [vmem:[%s1846_s6 + $0x10] sm:$0xff]  ;;  %v77_v2 = vld [vmem:[%s1846_s6 + $0x8] sm:$0xff]  ;;  %s1865_s27 = sld [smem:[#allocation10_spill]]  ;;  %vm84_vm0 = vcmask 261120   ;;  %vm204_vm1 = vcmask 64512  }
  0x11   :  { %103 = vmatpush.msra.mxu0 %v79_v0  ;;  %1132 = vmatpush.msra.mxu3 %v79_v0  ;;  %v76_v3 = vld [vmem:[%s1846_s6] sm:$0xff]  ;;  %v169_v6 = vld [vmem:[%s1848_s8 + $0x78] sm:$0xff]  ;;  %v168_v7 = vld [vmem:[%s1848_s8 + $0x70] sm:$0xff]  ;;  %s1866_s26 = sld [smem:[#allocation9_spill]]  ;;  %vm494_vm12 = vcmask 130048   ;;  %s1244_s19 = smov [#allocation5]  }
  0x12   :  { %174 = vmatpush.msra.mxu1 %v169_v6  ;;  %v167_v8 = vld [vmem:[%s1848_s8 + $0x68] sm:$0xff]  ;;  %v166_v9 = vld [vmem:[%s1848_s8 + $0x60] sm:$0xff]  ;;  %v165_v10 = vld [vmem:[%s1848_s8 + $0x58] sm:$0xff]  ;;  %s1633_s28 = sld [smem:[#allocation2 + $0x82]]  ;;  %s1058_s1 = sshll.u32 %s1244_s19, 4  ;;  %s1059_s1 = int_to_ptr.vmem [resolvable:$true] %s1058_s1 }
  0x13   :  { %104 = vmatpush.msra.mxu0 %v78_v1  ;;  %1133 = vmatpush.msra.mxu3 %v78_v1  ;;  %v164_v11 = vld [vmem:[%s1848_s8 + $0x50] sm:$0xff]  ;;  %v163_v12 = vld [vmem:[%s1848_s8 + $0x48] sm:$0xff]  ;;  %v162_v13 = vld [vmem:[%s1848_s8 + $0x40] sm:$0xff]  ;;  %s1638_s29 = sld [smem:[#allocation2 + $0x83]]  ;;  %s1060_s22 = sshll.u32 %s1858_s18, 4  ;;  %s1061_s22 = int_to_ptr.hbm [resolvable:$true] %s1060_s22 }
  0x14   :  { %175 = vmatpush.msra.mxu1 %v168_v7  ;;  %v161_v14 = vld [vmem:[%s1848_s8 + $0x38] sm:$0xff]  ;;  %v160_v15 = vld [vmem:[%s1848_s8 + $0x30] sm:$0xff]  ;;  %v159_v16 = vld [vmem:[%s1848_s8 + $0x28] sm:$0xff] }
  0x15   :  { %105 = vmatpush.msra.mxu0 %v77_v2  ;;  %1134 = vmatpush.msra.mxu3 %v77_v2  ;;  %v158_v17 = vld [vmem:[%s1848_s8 + $0x20] sm:$0xff]  ;;  %v157_v20 = vld [vmem:[%s1848_s8 + $0x18] sm:$0xff]  ;;  %v156_v21 = vld [vmem:[%s1848_s8 + $0x10] sm:$0xff] }
  0x16   :  { %v74_v4 = vld [vmem:[%s1865_s27] sm:$0xff]  ;;  %v75_v5 = vld [vmem:[%s1865_s27 + $0x8] sm:$0xff]  ;;  %176 = vmatpush.msra.mxu1 %v167_v8  ;;  %v241_v60 = vld [vmem:[%s1850_s10 + $0x18] sm:$0xff]  ;;  %s1630_s27 = sld [smem:[#allocation2 + $0x80]] }
  0x17   :  { %106 = vmatpush.msra.mxu0 %v76_v3  ;;  %1135 = vmatpush.msra.mxu3 %v76_v3  ;;  %v199_v18 = vld [vmem:[%s1844_s4] sm:$0xff]  ;;  %v155_v23 = vld [vmem:[%s1848_s8 + $0x8] sm:$0xff]  ;;  %v278_v61 = vld [vmem:[%s1852_s12 + $0x18] sm:$0xff] }
  0x18   :  { %1073 = vmatmul.msk.f32.vlgmr.msra.gmra.mxu0 %vm84_vm0, %v74_v4  ;;  %1074 = vmatmul.msk.f32.vlgmr.msra.gmra.mxu3 %vm84_vm0, %v75_v5  ;;  %v197_v19 = vld [vmem:[%s1866_s26] sm:$0xff]  ;;  %v198_v28 = vld [vmem:[%s1866_s26 + $0x8] sm:$0xff]  ;;  %v309_v62 = vld [vmem:[%s1854_s14 + $0x18] sm:$0xff]  ;;  %s1628_s26 = sld [smem:[#allocation2 + $0x81]] }
  0x19   :  { %177 = vmatpush.msra.mxu1 %v166_v9  ;;  %226 = vmatpush.msra.mxu2 %v199_v18  ;;  %v1144_v22 = vld [vmem:[%s1847_s7] ss:$0 sm:$0xff]  ;;  %v240_v63 = vld [vmem:[%s1850_s10 + $0x10] sm:$0xff]  ;;  %v239_v2 = vld [vmem:[%s1850_s10 + $0x8] sm:$0xff] }
  0x1a   :  { %1075 = vmatmul.msk.f32.vlgmr.msra.gmra.mxu2 %vm204_vm1, %v197_v19  ;;  %v154_v24 = vld [vmem:[%s1848_s8] sm:$0xff]  ;;  %264 = vmatpush.msrb.mxu3 %v241_v60  ;;  %v277_v0 = vld [vmem:[%s1852_s12 + $0x10] sm:$0xff]  ;;  %v276_v3 = vld [vmem:[%s1852_s12 + $0x8] sm:$0xff] }
  0x1b   :  { %178 = vmatpush.msra.mxu1 %v165_v10  ;;  %295 = vmatpush.msrb.mxu2 %v278_v61  ;;  %v308_v1 = vld [vmem:[%s1854_s14 + $0x10] sm:$0xff]  ;;  %v307_v4 = vld [vmem:[%s1854_s14 + $0x8] sm:$0xff]  ;;  %v238_v5 = vld [vmem:[%s1850_s10] sm:$0xff] }
  0x1c   :  { %326 = vmatpush.msrb.mxu0 %v309_v62  ;;  %265 = vmatpush.msrb.mxu3 %v240_v63  ;;  %v275_v6 = vld [vmem:[%s1852_s12] sm:$0xff]  ;;  %v1086_v8 = vld [vmem:[%s1850_s10 + $0x38] sm:$0xff] }
  0x1d   :  { %179 = vmatpush.msra.mxu1 %v164_v11  ;;  %296 = vmatpush.msrb.mxu2 %v277_v0  ;;  %v306_v7 = vld [vmem:[%s1854_s14] sm:$0xff]  ;;  %v1093_v9 = vld [vmem:[%s1852_s12 + $0x38] sm:$0xff]  ;;  %v1085_v11 = vld [vmem:[%s1850_s10 + $0x30] sm:$0xff] }
  0x1e   :  { %327 = vmatpush.msrb.mxu0 %v308_v1  ;;  %266 = vmatpush.msrb.mxu3 %v239_v2  ;;  %v1100_v10 = vld [vmem:[%s1854_s14 + $0x38] sm:$0xff]  ;;  %v1090_v18 = vld [vmem:[%s1852_s12 + $0x20] sm:$0xff] }
  0x1f   :  { %180 = vmatpush.msra.mxu1 %v163_v12  ;;  %297 = vmatpush.msrb.mxu2 %v276_v3  ;;  %v1092_v12 = vld [vmem:[%s1852_s12 + $0x30] sm:$0xff]  ;;  %v1097_v19 = vld [vmem:[%s1854_s14 + $0x20] sm:$0xff] }
  0x20   :  { %328 = vmatpush.msrb.mxu0 %v307_v4  ;;  %267 = vmatpush.msrb.mxu3 %v238_v5 }
  0x21   :  { %181 = vmatpush.msra.mxu1 %v162_v13  ;;  %298 = vmatpush.msrb.mxu2 %v275_v6  ;;  %v1099_v13 = vld [vmem:[%s1854_s14 + $0x30] sm:$0xff] }
  0x22   :  { %1076 = vmatmul.msk.f32.gmra.mxu2 %vm204_vm1, %v198_v28  ;;  %329 = vmatpush.msrb.mxu0 %v306_v7  ;;  %v1553_v7 = vld [vmem:[%s1843_s3] sm:$0xff] }
  0x23   :  { %182 = vmatpush.msra.mxu1 %v161_v14  ;;  %386 = vmatpush.msra.mxu3 %v1086_v8  ;;  %v1084_v14 = vld [vmem:[%s1850_s10 + $0x28] sm:$0xff] }
  0x24   :  { %419 = vmatpush.msra.mxu2 %v1093_v9  ;;  %452 = vmatpush.msra.mxu0 %v1100_v10  ;;  %v1151_v9 = vld [vmem:[%s1851_s11 + $0x1] ss:$0 sm:$0xff] }
  0x25   :  { %183 = vmatpush.msra.mxu1 %v160_v15  ;;  %v1091_v15 = vld [vmem:[%s1852_s12 + $0x28] sm:$0xff]  ;;  %387 = vmatpush.msra.mxu3 %v1085_v11  ;;  %s1766_s12 = sld [smem:[#allocation2 + $0x3]] }
  0x26   :  { %420 = vmatpush.msra.mxu2 %v1092_v12  ;;  %453 = vmatpush.msra.mxu0 %v1099_v13 }
  0x27   :  { %184 = vmatpush.msra.mxu1 %v159_v16  ;;  %v1098_v16 = vld [vmem:[%s1854_s14 + $0x28] sm:$0xff]  ;;  %388 = vmatpush.msra.mxu3 %v1084_v14 }
  0x28   :  { %421 = vmatpush.msra.mxu2 %v1091_v15  ;;  %454 = vmatpush.msra.mxu0 %v1098_v16 }
  0x29   :  { %185 = vmatpush.msra.mxu1 %v158_v17  ;;  %v1083_v17 = vld [vmem:[%s1850_s10 + $0x20] sm:$0xff] }
  0x2a   :  { %389 = vmatpush.msra.mxu3 %v1083_v17  ;;  %422 = vmatpush.msra.mxu2 %v1090_v18 }
  0x2b   :  { %186 = vmatpush.msra.mxu1 %v157_v20  ;;  %455 = vmatpush.msra.mxu0 %v1097_v19 }
  0x2d   :  { %187 = vmatpush.msra.mxu1 %v156_v21  ;;  %v1146_v21 = vld [vmem:[%s1845_s5] ss:$0 sm:$0xff]  ;;  %s1685_s5 = sld [smem:[#allocation2]] }
  0x2f   :  { %188 = vmatpush.msra.mxu1 %v155_v23 }
  0x31   :  { %189 = vmatpush.msra.mxu1 %v154_v24 }
  0x95   :  { %v108_v25 = vpop.f32.mrf.mxu0 }
  0x96   :  { %v109_v26 = vadd.f32 %v1144_v22, %v108_v25 }
  0x98   :  { %v114_v27 = vsub.f32 0.0, %v109_v26 }
  0x9a   :  { %v116_v29 = vmul.f32 1.442695, %v114_v27 }
  0x9b   :  { %v111_v30 = vpop.f32.mrf.mxu3 }
  0x9c   :  { %1154 = vpow2.f32 %v116_v29  ;;  %v112_v31 = vadd.f32 %v1144_v22, %v111_v30  ;;  %v1145_v22 = vld [vmem:[%s1849_s9] ss:$0 sm:$0xff]  ;;  %s1741_s9 = sld [smem:[#allocation2 + $0x2]] }
  0x9d   :  { %v228_v20 = vpop.f32.mrf.mxu2 }
  0x9e   :  { %v115_v32 = vsub.f32 0.0, %v112_v31  ;;  %v229_v23 = vadd.f32 %v1146_v21, %v228_v20 }
  0xa0   :  { %v118_v33 = vmul.f32 1.442695, %v115_v32 }
  0xa2   :  { %v1155_v34 = vpop.eup %1154  ;;  %1156 = vpow2.f32 %v118_v33 }
  0xa3   :  { %v120_v35 = vadd.f32 1.0, %v1155_v34 }
  0xa5   :  { %1158 = vrcp.f32 %v120_v35  ;;  %v133_v41 = vand.u32 2147483648, %v120_v35  ;;  %v131_v43 = vand.u32 2147483647, %v120_v35  ;;  %vm127_vm3 = vweird.f32 %v120_v35  ;;  %v231_v27 = vpop.f32.mrf.mxu2 }
  0xa6   :  { %v232_v29 = vadd.f32 %v1146_v21, %v231_v27 }
  0xa7   :  { %v134_v47 = vor.u32 1.1754944e-38, %v133_v41  ;;  %vm132_vm5 = vcmp.eq.f32.partialorder %v131_v43, 8.507059e+37 }
  0xa8   :  { %v1157_v36 = vpop.eup %1156 }
  0xa9   :  { %v121_v37 = vadd.f32 1.0, %v1157_v36 }
  0xab   :  { %v1159_v38 = vpop.eup %1158  ;;  %1160 = vrcp.f32 %v121_v37  ;;  %v148_v51 = vand.u32 2147483648, %v121_v37  ;;  %v146_v54 = vand.u32 2147483647, %v121_v37  ;;  %vm142_vm7 = vweird.f32 %v121_v37 }
  0xac   :  { %v123_v39 = vmul.f32 %v1159_v38, %v120_v35  ;;  %vm128_vm2 = vweird.f32 %v1159_v38  ;;  %v1147_v35 = vld [vmem:[%s1855_s15] ss:$0 sm:$0xff] }
  0xad   :  { %vm129_vm4 = vmor %vm127_vm3, %vm128_vm2  ;;  %v149_v56 = vor.u32 1.1754944e-38, %v148_v51  ;;  %vm147_vm9 = vcmp.eq.f32.partialorder %v146_v54, 8.507059e+37 }
  0xae   :  { %v124_v40 = vsub.f32 1.0, %v123_v39 }
  0xb0   :  { %v125_v42 = vmul.f32 %v1159_v38, %v124_v40 }
  0xb1   :  { %v1161_v44 = vpop.eup %1160 }
  0xb2   :  { %v126_v45 = vadd.f32 %v1159_v38, %v125_v42  ;;  %v138_v46 = vmul.f32 %v1161_v44, %v121_v37  ;;  %vm143_vm6 = vweird.f32 %v1161_v44  ;;  %v1149_v37 = vld [vmem:[%s1853_s13] ss:$0 sm:$0xff] }
  0xb3   :  { %vm144_vm8 = vmor %vm142_vm7, %vm143_vm6 }
  0xb4   :  { %v130_v48 = vsel %vm129_vm4, %v1159_v38, %v126_v45  ;;  %v139_v49 = vsub.f32 1.0, %v138_v46 }
  0xb5   :  { %v135_v50 = vsel %vm132_vm5, %v134_v47, %v130_v48 }
  0xb6   :  { %v152_v52 = vmul.f32 %v135_v50, %v109_v26  ;;  %v140_v53 = vmul.f32 %v1161_v44, %v139_v49 }
  0xb8   :  { %190 = vmatmul.f32.vlgmr.msra.gmra.mxu1 %v152_v52  ;;  %v141_v55 = vadd.f32 %v1161_v44, %v140_v53 }
  0xba   :  { %v145_v57 = vsel %vm144_vm8, %v1161_v44, %v141_v55  ;;  %v1148_v44 = vld [vmem:[%s1851_s11] ss:$0 sm:$0xff]  ;;  %v1150_v55 = vld [vmem:[%s1855_s15 + $0x1] ss:$0 sm:$0xff] }
  0xbb   :  { %v150_v58 = vsel %vm147_vm9, %v149_v56, %v145_v57  ;;  %v1152_v57 = vld [vmem:[%s1853_s13 + $0x1] ss:$0 sm:$0xff]  ;;  %s1246_s13 = smov 8  }
  0xbc   :  { %v153_v59 = vmul.f32 %v150_v58, %v112_v31 }
  0xc0   :  { %193 = vmatmul.f32.gmra.mxu1 %v153_v59 }
 0x135   :  { %v191_v24 = vpop.f32.mrf.mxu1 }
 0x136   :  { %v192_v25 = vadd.f32 %v1145_v22, %v191_v24 }
 0x138   :  { %v234_v26 = vadd.f32 %v229_v23, %v192_v25 }
 0x13a   :  { %v236_v28 = vmax.f32 %v234_v26, 0.0 }
 0x13c   :  { %1077 = vmatmul.msk.f32.vlgmr.msrb.gmra.mxu3 %vm84_vm0, %v236_v28  ;;  %1079 = vmatmul.msk.f32.vlgmr.msrb.gmra.mxu2 %vm84_vm0, %v236_v28 }
 0x13d   :  { %1081 = vmatmul.msk.f32.vlgmr.msrb.gmra.mxu0 %vm84_vm0, %v236_v28  ;;  %v194_v30 = vpop.f32.mrf.mxu1 }
 0x13e   :  { %v195_v31 = vadd.f32 %v1145_v22, %v194_v30 }
 0x140   :  { %v235_v32 = vadd.f32 %v232_v29, %v195_v31 }
 0x142   :  { %v237_v33 = vmax.f32 %v235_v32, 0.0 }
 0x144   :  { %1078 = vmatmul.msk.f32.gmra.mxu3 %vm84_vm0, %v237_v33  ;;  %1080 = vmatmul.msk.f32.gmra.mxu2 %vm84_vm0, %v237_v33 }
 0x145   :  { %1082 = vmatmul.msk.f32.gmra.mxu0 %vm84_vm0, %v237_v33 }
 0x14c   :  { %1088 = vmatmul.msk.f32.vlgmr.msra.gmra.mxu3 %vm84_vm0, %v236_v28  ;;  %1095 = vmatmul.msk.f32.vlgmr.msra.gmra.mxu2 %vm84_vm0, %v236_v28 }
 0x14d   :  { %1102 = vmatmul.msk.f32.vlgmr.msra.gmra.mxu0 %vm84_vm0, %v236_v28 }
 0x154   :  { %1089 = vmatmul.msk.f32.gmra.mxu3 %vm84_vm0, %v237_v33  ;;  %1096 = vmatmul.msk.f32.gmra.mxu2 %vm84_vm0, %v237_v33 }
 0x155   :  { %1103 = vmatmul.msk.f32.gmra.mxu0 %vm84_vm0, %v237_v33 }
 0x1ba   :  { %v331_v34 = vpop.f32.mrf.mxu0 }
 0x1bb   :  { %v1523_v40 = vadd.f32 %v1147_v35, %v331_v34 }
 0x1bf   :  { %v269_v36 = vpop.f32.mrf.mxu3  ;;  %v300_v38 = vpop.f32.mrf.mxu2 }
 0x1c0   :  { %v301_v41 = vadd.f32 %v1149_v37, %v300_v38  ;;  %v270_v50 = vadd.f32 %v1148_v44, %v269_v36 }
 0x1c2   :  { %v334_v39 = vpop.f32.mrf.mxu0  ;;  %v351_v45 = vmul.f32 1.442695, %v301_v41  ;;  %v341_v54 = vmul.f32 1.442695, %v270_v50  ;;  %vm347_vm10 = vcmp.gt.f32.partialorder %v301_v41, 0.0  ;;  %v349_v60 = vadd.f32 1.0, %v301_v41 }
 0x1c3   :  { %v1525_v42 = vadd.f32 %v1147_v35, %v334_v39  ;;  %v339_v18 = vadd.f32 1.0, %v270_v50  ;;  %vm337_vm14 = vcmp.gt.f32.partialorder %v270_v50, 0.0 }
 0x1c4   :  { %1162 = vpow2.f32 %v351_v45 }
 0x1c5   :  { %v1529_v43 = vpack.c.bf16 %v1525_v42, %v1523_v40 }
 0x1c7   :  { %528 = vmatpush.bf16.msrb.mxu1 %v1529_v43  ;;  %v272_v46 = vpop.f32.mrf.mxu3  ;;  %v303_v47 = vpop.f32.mrf.mxu2 }
 0x1c8   :  { %v304_v48 = vadd.f32 %v1149_v37, %v303_v47  ;;  %v273_v49 = vadd.f32 %v1148_v44, %v272_v46  ;;  %v490_v44 = vld [vmem:[%s1843_s3] sm:$0xff]  }
 0x1c9   :  { %v492_v45 = vunpack.c.l.bf16 %v490_v44  ;;  %v493_v46 = vunpack.c.h.bf16 %v490_v44 }
 0x1ca   :  { %v457_v51 = vpop.f32.mrf.mxu0  ;;  %v353_v52 = vmul.f32 1.442695, %v304_v48  ;;  %v343_v53 = vmul.f32 1.442695, %v273_v49  ;;  %v1163_v59 = vpop.eup %1162  ;;  %v350_v61 = vadd.f32 1.0, %v304_v48  ;;  %vm348_vm11 = vcmp.gt.f32.partialorder %v304_v48, 0.0 }
 0x1cb   :  { %707 = vmatpush.bf16.msra.mxu1 %v1529_v43  ;;  %v1542_v0 = vadd.f32 %v1150_v55, %v457_v51  ;;  %v355_v3 = vsel %vm347_vm10, %v349_v60, %v1163_v59  ;;  %v340_v15 = vadd.f32 1.0, %v273_v49  ;;  %vm338_vm13 = vcmp.gt.f32.partialorder %v273_v49, 0.0 }
 0x1cc   :  { %1164 = vpow2.f32 %v353_v52 }
 0x1cd   :  { %1166 = vpow2.f32 %v343_v53 }
 0x1ce   :  { %1168 = vpow2.f32 %v341_v54 }
 0x1cf   :  { %v391_v56 = vpop.f32.mrf.mxu3  ;;  %v424_v58 = vpop.f32.mrf.mxu2 }
 0x1d0   :  { %v425_v1 = vadd.f32 %v1152_v57, %v424_v58  ;;  %v392_v20 = vadd.f32 %v1151_v9, %v391_v56 }
 0x1d2   :  { %v460_v62 = vpop.f32.mrf.mxu0  ;;  %v1165_v63 = vpop.eup %1164  ;;  %v477_v10 = vmul.f32 1.442695, %v425_v1  ;;  %v467_v25 = vmul.f32 1.442695, %v392_v20  ;;  %v475_v27 = vadd.f32 1.0, %v425_v1  ;;  %vm473_vm15 = vcmp.gt.f32.partialorder %v425_v1, 0.0 }
 0x1d3   :  { %v1544_v2 = vadd.f32 %v1150_v55, %v460_v62  ;;  %v356_v4 = vsel %vm348_vm11, %v350_v61, %v1165_v63  ;;  %v1167_v8 = vpop.eup %1166  ;;  %v465_v37 = vadd.f32 1.0, %v392_v20  ;;  %vm463_vm2 = vcmp.gt.f32.partialorder %v392_v20, 0.0 }
 0x1d4   :  { %v358_v6 = vpack.c.bf16 %v356_v4, %v355_v3  ;;  %v1169_v14 = vpop.eup %1168  ;;  %v346_v19 = vsel %vm338_vm13, %v340_v15, %v1167_v8  ;;  %1170 = vpow2.f32 %v477_v10  ;;  %v1243_v3 = vmov 16  }
 0x1d5   :  { %v1548_v5 = vpack.c.bf16 %v1544_v2, %v1542_v0  ;;  %v345_v22 = vsel %vm337_vm14, %v339_v18, %v1169_v14  ;;  %1141 = vset.pattern.permute.xlu0 %v1243_v3  ;;  %1142 = vset.pattern.permute.xlu1 %v1243_v3 }
 0x1d6   :  { %v499_v13 = vsel %vm494_vm12, %v358_v6, 0  ;;  %v357_v23 = vpack.c.bf16 %v346_v19, %v345_v22  ;;  %1143 = vset.pattern.permute.xlu2 %v1243_v3 }
 0x1d7   :  { %616 = vmatpush.bf16.msrb.mxu0 %v1548_v5  ;;  %v394_v11 = vpop.f32.mrf.mxu3  ;;  %v427_v12 = vpop.f32.mrf.mxu2  ;;  %508 = vmatpush.bf16.xpose.msrb.mxu3 %v499_v13 }
 0x1d8   :  { %v428_v16 = vadd.f32 %v1152_v57, %v427_v12  ;;  %v395_v17 = vadd.f32 %v1151_v9, %v394_v11 }
 0x1da   :  { %v479_v21 = vmul.f32 1.442695, %v428_v16  ;;  %v469_v24 = vmul.f32 1.442695, %v395_v17  ;;  %v1171_v26 = vpop.eup %1170  ;;  %v476_v28 = vadd.f32 1.0, %v428_v16  ;;  %vm474_vm0 = vcmp.gt.f32.partialorder %v428_v16, 0.0 }
 0x1db   :  { %v481_v30 = vsel %vm473_vm15, %v475_v27, %v1171_v26  ;;  %v466_v35 = vadd.f32 1.0, %v395_v17  ;;  %vm464_vm1 = vcmp.gt.f32.partialorder %v395_v17, 0.0 }
 0x1dc   :  { %1172 = vpow2.f32 %v479_v21 }
 0x1dd   :  { %1174 = vpow2.f32 %v469_v24 }
 0x1de   :  { %1105 = vmatmul.msk.bf16.vlgmr.msrb.gmra.mxu3 %vm494_vm12, %v357_v23  ;;  %1176 = vpow2.f32 %v467_v25 }
 0x1df   :  { %687 = vmatpush.bf16.msra.mxu3 %v1553_v7 }
 0x1e2   :  { %v1173_v29 = vpop.eup %1172 }
 0x1e3   :  { %858 = vmatpush.bf16.msrb.mxu3 %v1529_v43  ;;  %v482_v31 = vsel %vm474_vm0, %v476_v28, %v1173_v29  ;;  %v1175_v33 = vpop.eup %1174 }
 0x1e4   :  { %v484_v32 = vpack.c.bf16 %v482_v31, %v481_v30  ;;  %v1177_v36 = vpop.eup %1176  ;;  %v472_v38 = vsel %vm464_vm1, %v466_v35, %v1175_v33 }
 0x1e5   :  { %v471_v39 = vsel %vm463_vm2, %v465_v37, %v1177_v36 }
 0x1e6   :  { %v587_v34 = vsel %vm494_vm12, %v484_v32, 0  ;;  %v483_v41 = vpack.c.bf16 %v472_v38, %v471_v39 }
 0x1e7   :  { %596 = vmatpush.bf16.xpose.msrb.mxu2 %v587_v34 }
 0x1ee   :  { %1108 = vmatmul.msk.bf16.vlgmr.msrb.gmra.mxu2 %vm494_vm12, %v483_v41  ;;  %1115 = vmatmul.msk.bf16.vlgmr.msra.gmra.mxu3 %vm494_vm12, %v1553_v7 }
 0x1ef   :  { %775 = vmatpush.bf16.msra.mxu2 %v1548_v5 }
 0x261   :  { %v510_v43 = vpop.f32.mrf.mxu3 }
 0x262   :  { %v515_v48 = vmul.f32 %v510_v43, %v492_v45 }
 0x269   :  { %v512_v47 = vpop.f32.mrf.mxu3 }
 0x26a   :  { %v516_v49 = vmul.f32 %v512_v47, %v493_v46 }
 0x26c   :  { %v517_v50 = vpack.c.bf16 %v516_v49, %v515_v48  ;;  %v1127_v49 = vld [vmem:[%s1856_s16 + $0x10] sm:$0xff] }
 0x26e   :  { %1106 = vmatmul.msk.bf16.vlgmr.msrb.gmra.mxu1 %vm494_vm12, %v517_v50 }
 0x26f   :  { %926 = vmatpush.bf16.msrb.mxu1 %v1548_v5 }
 0x271   :  { %v598_v51 = vpop.f32.mrf.mxu2  ;;  %v689_v52 = vpop.f32.mrf.mxu3 }
 0x272   :  { %v603_v53 = vmul.f32 %v598_v51, %v492_v45  ;;  %v694_v54 = vmul.f32 %v689_v52, %v510_v43  ;;  %v762_v55 = vmul.f32 %v689_v52, %v598_v51 }
 0x279   :  { %v600_v56 = vpop.f32.mrf.mxu2  ;;  %v691_v57 = vpop.f32.mrf.mxu3 }
 0x27a   :  { %v604_v58 = vmul.f32 %v600_v56, %v493_v46  ;;  %v695_v59 = vmul.f32 %v691_v57, %v512_v47  ;;  %v763_v60 = vmul.f32 %v691_v57, %v600_v56  ;;  %v830_v61 = vpack.c.bf16 %v691_v57, %v689_v52  ;;  %v1128_v46 = vld [vmem:[%s1856_s16 + $0x18] sm:$0xff] }
 0x27c   :  { %v605_v62 = vpack.c.bf16 %v604_v58, %v603_v53  ;;  %v696_v63 = vpack.c.bf16 %v695_v59, %v694_v54  ;;  %v764_v1 = vpack.c.bf16 %v763_v60, %v762_v55  ;;  %838 = vmatpush.bf16.msra.mxu0 %v830_v61 }
 0x27e   :  { %1109 = vmatmul.msk.bf16.vlgmr.msrb.gmra.mxu0 %vm494_vm12, %v605_v62  ;;  %1116 = vmatmul.msk.bf16.vlgmr.msra.gmra.mxu1 %vm494_vm12, %v696_v63 }
 0x27f   :  { %1118 = vmatmul.msk.bf16.vlgmr.msra.gmra.mxu2 %vm494_vm12, %v764_v1 }
 0x280   :  { %1041 = vmatpush.msrb.mxu0 %v1128_v46 }
 0x282   :  { %1042 = vmatpush.msrb.mxu0 %v1127_v49 }
 0x28e   :  { %1120 = vmatmul.msk.bf16.vlgmr.msra.gmra.mxu0 %vm494_vm12, %v1553_v7 }
 0x2eb   :  { %v1578_v4 = vpop.f32.mrf.mxu1 }
 0x2ec   :  { %v535_v5 = vadd.f32 1e-05, %v1578_v4 }
 0x2ee   :  { %540 = vperm.xlu0 %1141, %v535_v5  }
 0x2f3   :  { %v1581_v6 = vpop.f32.mrf.mxu1 }
 0x2f4   :  { %v536_v8 = vadd.f32 1e-05, %v1581_v6 }
 0x2f6   :  { %545 = vperm.xlu1 %1142, %v536_v8  }
 0x2fb   :  { %v1584_v9 = vpop.f32.mrf.mxu0  ;;  %v1586_v10 = vpop.f32.mrf.mxu1 }
 0x2fc   :  { %v714_v7 = vadd.f32 1e-05, %v1586_v10  ;;  %v623_v11 = vadd.f32 1e-05, %v1584_v9 }
 0x2fe   :  { %628 = vperm.xlu2 %1143, %v623_v11   ;;  %719 = vperm.xlu0 %1141, %v714_v7  }
 0x302   :  { %v1590_v12 = vpop.f32.mrf.mxu2 }
 0x303   :  { %v1592_v13 = vpop.f32.mrf.mxu0  ;;  %v1594_v14 = vpop.f32.mrf.mxu1  ;;  %v782_v15 = vadd.f32 1e-05, %v1590_v12 }
 0x304   :  { %v715_v16 = vadd.f32 1e-05, %v1594_v14  ;;  %v624_v18 = vadd.f32 1e-05, %v1592_v13 }
 0x306   :  { %787 = vperm.xlu0 %1141, %v782_v15   ;;  %724 = vperm.xlu2 %1143, %v715_v16  }
 0x30a   :  { %v1613_v34 = vpop.f32.mrf.mxu2 }
 0x30b   :  { %v840_v17 = vpop.f32.mrf.mxu0  ;;  %v783_v35 = vadd.f32 1e-05, %v1613_v34 }
 0x30c   :  { %v845_v20 = vmul.f32 %v840_v17, %v510_v43  ;;  %v913_v21 = vmul.f32 %v840_v17, %v598_v51  ;;  %v666_v17 = vstv %s1628_s26 }
 0x30e   :  { %633 = vperm.xlu0 %1141, %v624_v18  }
 0x313   :  { %v842_v19 = vpop.f32.mrf.mxu0 }
 0x314   :  { %v846_v22 = vmul.f32 %v842_v19, %v512_v47  ;;  %v914_v23 = vmul.f32 %v842_v19, %v600_v56 }
 0x316   :  { %v847_v24 = vpack.c.bf16 %v846_v22, %v845_v20  ;;  %v915_v25 = vpack.c.bf16 %v914_v23, %v913_v21  ;;  %v487_v22 = vstv %s1630_s27  ;;  %v825_v23 = vstv %s1633_s28 }
 0x318   :  { %1121 = vmatmul.msk.bf16.vlgmr.msrb.gmra.mxu3 %vm494_vm12, %v847_v24  ;;  %1123 = vmatmul.msk.bf16.vlgmr.msrb.gmra.mxu1 %vm494_vm12, %v915_v25 }
 0x358   :  { %v629_v38 = vpop.permute.xlu2 %628 }
 0x359   :  { %1178 = vrcp.f32 %v629_v38  ;;  %v647_v55 = vand.u32 2147483648, %v629_v38  ;;  %vm641_vm4 = vweird.f32 %v629_v38  ;;  %v645_v56 = vand.u32 2147483647, %v629_v38 }
 0x35b   :  { %v648_v61 = vor.u32 1.1754944e-38, %v647_v55  ;;  %vm646_vm9 = vcmp.eq.f32.partialorder %v645_v56, 8.507059e+37 }
 0x35f   :  { %v1179_v41 = vpop.eup %1178 }
 0x360   :  { %v1616_v36 = vpop.permute.xlu0 %540  ;;  %v637_v44 = vmul.f32 %v1179_v41, %v629_v38  ;;  %v1623_v48 = vpop.permute.xlu2 %724  ;;  %vm642_vm3 = vweird.f32 %v1179_v41 }
 0x361   :  { %vm643_vm6 = vmor %vm641_vm4, %vm642_vm3  ;;  %vm553_vm1 = vweird.f32 %v1616_v36 }
 0x362   :  { %v638_v47 = vsub.f32 1.0, %v637_v44 }
 0x364   :  { %v639_v51 = vmul.f32 %v1179_v41, %v638_v47 }
 0x366   :  { %v640_v53 = vadd.f32 %v1179_v41, %v639_v51 }
 0x368   :  { %v644_v59 = vsel %vm643_vm6, %v1179_v41, %v640_v53  ;;  %v1635_v62 = vpop.permute.xlu1 %545 }
 0x369   :  { %v649_v3 = vsel %vm646_vm9, %v648_v61, %v644_v59  ;;  %v559_v59 = vand.u32 2147483648, %v1616_v36  ;;  %vm568_vm4 = vweird.f32 %v1635_v62 }
 0x36a   :  { %v650_v11 = vmul.f32 %v649_v3, %v1584_v9 }
 0x36c   :  { %v667_v24 = vmul.f32 %v666_v17, %v650_v11 }
 0x370   :  { %v1618_v37 = vpop.permute.xlu0 %719 }
 0x378   :  { %v788_v39 = vpop.permute.xlu0 %787 }
 0x379   :  { %1180 = vrcp.f32 %v788_v39  ;;  %v806_v58 = vand.u32 2147483648, %v788_v39  ;;  %vm800_vm7 = vweird.f32 %v788_v39  ;;  %v804_v60 = vand.u32 2147483647, %v788_v39 }
 0x37b   :  { %v807_v5 = vor.u32 1.1754944e-38, %v806_v58  ;;  %vm805_vm10 = vcmp.eq.f32.partialorder %v804_v60, 8.507059e+37 }
 0x37f   :  { %v1181_v43 = vpop.eup %1180 }
 0x380   :  { %v796_v45 = vmul.f32 %v1181_v43, %v788_v39  ;;  %vm801_vm5 = vweird.f32 %v1181_v43  ;;  %v976_v39 = vstv %s1638_s29  ;;  %v1679_v55 = vpop.permute.xlu0 %633 }
 0x381   :  { %vm802_vm8 = vmor %vm800_vm7, %vm801_vm5 }
 0x382   :  { %v797_v50 = vsub.f32 1.0, %v796_v45 }
 0x384   :  { %v798_v52 = vmul.f32 %v1181_v43, %v797_v50 }
 0x386   :  { %v799_v57 = vadd.f32 %v1181_v43, %v798_v52  ;;  %v982_v52 = vld [vmem:[%s1856_s16] sm:$0xff] }
 0x388   :  { %v803_v63 = vsel %vm802_vm8, %v1181_v43, %v799_v57  ;;  %v557_v57 = vand.u32 2147483647, %v1616_v36  ;;  %vm732_vm8 = vweird.f32 %v1618_v37 }
 0x389   :  { %v808_v7 = vsel %vm805_vm10, %v807_v5, %v803_v63 }
 0x38a   :  { %v809_v19 = vmul.f32 %v808_v7, %v1590_v12  ;;  %vm1700_vm3 = vcmp.eq.f32.partialorder %v557_v57, 8.507059e+37  ;;  %v560_v7 = vor.u32 1.1754944e-38, %v559_v59 }
 0x395   :  { %v1601_v26 = vpop.f32.mrf.mxu1 }
 0x396   :  { %v933_v27 = vadd.f32 1e-05, %v1601_v26 }
 0x398   :  { %938 = vperm.xlu2 %1143, %v933_v27  }
 0x39b   :  { %v1604_v28 = vpop.f32.mrf.mxu3 }
 0x39c   :  { %v865_v29 = vadd.f32 1e-05, %v1604_v28 }
 0x39d   :  { %v1607_v30 = vpop.f32.mrf.mxu1 }
 0x39e   :  { %v934_v31 = vadd.f32 1e-05, %v1607_v30  ;;  %870 = vperm.xlu1 %1142, %v865_v29  }
 0x3a0   :  { %943 = vperm.xlu2 %1143, %v934_v31   ;;  %v488_v31 = vmul.f32 %v487_v22, %v1542_v0  ;;  %v983_v0 = vld [vmem:[%s1856_s16 + $0x8] sm:$0xff]  ;;  %s1694_s16 = sld [smem:[#allocation2 + $0x1]] }
 0x3a1   :  { %1004 = vmatpush.msrb.mxu2 %v983_v0 }
 0x3a2   :  { %v669_v44 = vadd.f32 %v667_v24, %v488_v31  ;;  %v660_v31 = vand.u32 2147483647, %v1679_v55 }
 0x3a3   :  { %v1610_v32 = vpop.f32.mrf.mxu3  ;;  %1005 = vmatpush.msrb.mxu2 %v982_v52 }
 0x3a4   :  { %v866_v33 = vadd.f32 1e-05, %v1610_v32 }
 0x3a6   :  { %875 = vperm.xlu1 %1142, %v866_v33   ;;  %v826_v33 = vmul.f32 %v825_v23, %v809_v19  ;;  %v574_v19 = vand.u32 2147483648, %v1635_v62 }
 0x3a8   :  { %v828_v47 = vadd.f32 %v826_v33, %v669_v44 }
 0x3ae   :  { %792 = vperm.xlu1 %1142, %v783_v35  }
 0x3f2   :  { %v939_v54 = vpop.permute.xlu2 %938 }
 0x3f3   :  { %1182 = vrcp.f32 %v939_v54  ;;  %v957_v18 = vand.u32 2147483648, %v939_v54  ;;  %v955_v21 = vand.u32 2147483647, %v939_v54  ;;  %vm951_vm13 = vweird.f32 %v939_v54 }
 0x3f4   :  { %1184 = vrcp.f32 %v1616_v36 }
 0x3f5   :  { %1186 = vrcp.f32 %v1635_v62  ;;  %v958_v12 = vor.u32 1.1754944e-38, %v957_v18  ;;  %vm956_vm15 = vcmp.eq.f32.partialorder %v955_v21, 8.507059e+37 }
 0x3f6   :  { %1188 = vrcp.f32 %v1618_v37 }
 0x3f7   :  { %1190 = vrcp.f32 %v1623_v48 }
 0x3f8   :  { %1192 = vrcp.f32 %v1679_v55 }
 0x3f9   :  { %v1183_v1 = vpop.eup %1182 }
 0x3fa   :  { %v947_v8 = vmul.f32 %v1183_v1, %v939_v54  ;;  %v1642_v16 = vpop.eup %1184  ;;  %vm952_vm11 = vweird.f32 %v1183_v1  ;;  %v1704_v5 = vpop.permute.xlu2 %943 }
 0x3fb   :  { %v549_v9 = vmul.f32 %v1642_v16, %v1616_v36  ;;  %v1652_v27 = vpop.eup %1186  ;;  %vm953_vm14 = vmor %vm951_vm13, %vm952_vm11  ;;  %vm554_vm0 = vweird.f32 %v1642_v16  ;;  %vm747_vm11 = vweird.f32 %v1623_v48 }
 0x3fc   :  { %v948_v15 = vsub.f32 1.0, %v947_v8  ;;  %v1655_v29 = vpop.eup %1188  ;;  %v564_v45 = vmul.f32 %v1652_v27, %v1635_v62  ;;  %vm1696_vm2 = vmor %vm553_vm1, %vm554_vm0  ;;  %vm569_vm5 = vweird.f32 %v1652_v27 }
 0x3fd   :  { %v550_v41 = vsub.f32 1.0, %v549_v9  ;;  %v728_v46 = vmul.f32 %v1655_v29, %v1618_v37  ;;  %v1673_v50 = vpop.eup %1190  ;;  %vm733_vm6 = vweird.f32 %v1655_v29  ;;  %vm1725_vm7 = vmor %vm568_vm4, %vm569_vm5  ;;  %v572_v9 = vand.u32 2147483647, %v1635_v62 }
 0x3fe   :  { %v949_v20 = vmul.f32 %v1183_v1, %v948_v15  ;;  %v565_v53 = vsub.f32 1.0, %v564_v45  ;;  %v743_v56 = vmul.f32 %v1673_v50, %v1623_v48  ;;  %v1717_v18 = vpop.eup %1192  ;;  %vm1733_vm9 = vmor %vm732_vm8, %vm733_vm6  ;;  %vm748_vm10 = vweird.f32 %v1673_v50 }
 0x3ff   :  { %v551_v51 = vmul.f32 %v1642_v16, %v550_v41  ;;  %v729_v54 = vsub.f32 1.0, %v728_v46  ;;  %v575_v41 = vor.u32 1.1754944e-38, %v574_v19  ;;  %v578_v45 = vstv %s1694_s16 }
 0x400   :  { %v950_v25 = vadd.f32 %v1183_v1, %v949_v20  ;;  %v566_v60 = vmul.f32 %v1652_v27, %v565_v53  ;;  %v744_v63 = vsub.f32 1.0, %v743_v56  ;;  %v738_v20 = vand.u32 2147483648, %v1618_v37 }
 0x401   :  { %v552_v58 = vadd.f32 %v1642_v16, %v551_v51  ;;  %v730_v61 = vmul.f32 %v1655_v29, %v729_v54  ;;  %vm573_vm13 = vcmp.eq.f32.partialorder %v572_v9, 8.507059e+37  ;;  %v753_v46 = vand.u32 2147483648, %v1623_v48 }
 0x402   :  { %v954_v35 = vsel %vm953_vm14, %v1183_v1, %v950_v25  ;;  %v567_v11 = vadd.f32 %v1652_v27, %v566_v60  ;;  %v736_v25 = vand.u32 2147483647, %v1618_v37  ;;  %v652_v37 = vmul.f32 %v1717_v18, %v1679_v55 }
 0x403   :  { %v959_v38 = vsel %vm956_vm15, %v958_v12, %v954_v35  ;;  %v556_v8 = vsel %vm1696_vm2, %v1642_v16, %v552_v58  ;;  %v731_v15 = vadd.f32 %v1655_v29, %v730_v61  ;;  %v745_v16 = vmul.f32 %v1673_v50, %v744_v63  ;;  %vm1760_vm15 = vmor %vm747_vm11, %vm748_vm10 }
 0x404   :  { %v960_v43 = vmul.f32 %v959_v38, %v1601_v26  ;;  %v561_v21 = vsel %vm1700_vm3, %v560_v7, %v556_v8  ;;  %v361_v12 = vstv %s1685_s5  ;;  %v571_v33 = vsel %vm1725_vm7, %v1652_v27, %v567_v11 }
 0x405   :  { %v735_v62 = vsel %vm1733_vm9, %v1655_v29, %v731_v15  ;;  %v562_v35 = vmul.f32 %v561_v21, %v1578_v4  ;;  %v746_v38 = vadd.f32 %v1673_v50, %v745_v16  ;;  %vm737_vm14 = vcmp.eq.f32.partialorder %v736_v25, 8.507059e+37 }
 0x406   :  { %v977_v49 = vmul.f32 %v976_v39, %v960_v43  ;;  %v739_v43 = vor.u32 1.1754944e-38, %v738_v20  ;;  %v576_v29 = vsel %vm573_vm13, %v575_v41, %v571_v33  ;;  %v751_v51 = vand.u32 2147483647, %v1623_v48 }
 0x407   :  { %v362_v52 = vmul.f32 %v361_v12, %v1523_v40  ;;  %v579_v53 = vmul.f32 %v578_v45, %v562_v35  ;;  %v750_v54 = vsel %vm1760_vm15, %v1673_v50, %v746_v38  ;;  %v577_v59 = vmul.f32 %v576_v29, %v1581_v6 }
 0x408   :  { %v979_v26 = vadd.f32 %v977_v49, %v828_v47  ;;  %v740_v47 = vsel %vm737_vm14, %v739_v43, %v735_v62  ;;  %v754_v60 = vor.u32 1.1754944e-38, %v753_v46  ;;  %v363_v63 = vmul.f32 %v361_v12, %v1525_v42 }
 0x409   :  { %v741_v57 = vmul.f32 %v740_v47, %v1586_v10  ;;  %vm752_vm1 = vcmp.eq.f32.partialorder %v751_v51, 8.507059e+37  ;;  %v757_v1 = vstv %s1741_s9  ;;  %v581_v10 = vadd.f32 %v579_v53, %v362_v52 }
 0x40a   :  { %1129 = vmatmul.msk.f32.vlgmr.msrb.gmra.mxu0 %vm494_vm12, %v979_v26  ;;  %v653_v26 = vsub.f32 1.0, %v652_v37  ;;  %v755_v8 = vsel %vm752_vm1, %v754_v60, %v750_v54  ;;  %v580_v16 = vmul.f32 %v578_v45, %v577_v59  ;;  %vm657_vm4 = vweird.f32 %v1717_v18 }
 0x40b   :  { %v758_v11 = vmul.f32 %v757_v1, %v741_v57  ;;  %vm656_vm6 = vweird.f32 %v1679_v55  ;;  %v662_v9 = vand.u32 2147483648, %v1679_v55  ;;  %vm661_vm10 = vcmp.eq.f32.partialorder %v660_v31, 8.507059e+37 }
 0x40c   :  { %v654_v50 = vmul.f32 %v1717_v18, %v653_v26  ;;  %vm1794_vm7 = vmor %vm656_vm6, %vm657_vm4  ;;  %v582_v55 = vadd.f32 %v580_v16, %v363_v63  ;;  %vm966_vm15 = vweird.f32 %v1704_v5  ;;  %v970_v54 = vand.u32 2147483647, %v1704_v5 }
 0x40d   :  { %v760_v37 = vadd.f32 %v758_v11, %v581_v10  ;;  %v663_v45 = vor.u32 1.1754944e-38, %v662_v9 }
 0x40e   :  { %v655_v21 = vadd.f32 %v1717_v18, %v654_v50 }
 0x410   :  { %v1711_v36 = vpop.permute.xlu1 %870 }
 0x411   :  { %1194 = vrcp.f32 %v1711_v36  ;;  %v889_v48 = vand.u32 2147483648, %v1711_v36  ;;  %v887_v40 = vand.u32 2147483647, %v1711_v36  ;;  %vm883_vm2 = vweird.f32 %v1711_v36 }
 0x412   :  { %1196 = vrcp.f32 %v1704_v5 }
 0x413   :  { %v890_v15 = vor.u32 1.1754944e-38, %v889_v48  ;;  %vm888_vm5 = vcmp.eq.f32.partialorder %v887_v40, 8.507059e+37 }
 0x417   :  { %v1195_v44 = vpop.eup %1194 }
 0x418   :  { %v1752_v27 = vpop.eup %1196  ;;  %v879_v49 = vmul.f32 %v1195_v44, %v1711_v36  ;;  %v1756_v0 = vpop.permute.xlu1 %875  ;;  %vm884_vm0 = vweird.f32 %v1195_v44  ;;  %v908_v36 = vstv %s1766_s12 }
 0x419   :  { %1198 = vrcp.f32 %v1756_v0  ;;  %v962_v58 = vmul.f32 %v1752_v27, %v1704_v5  ;;  %vm885_vm3 = vmor %vm883_vm2, %vm884_vm0  ;;  %v904_v62 = vand.u32 2147483648, %v1756_v0  ;;  %v902_v41 = vand.u32 2147483647, %v1756_v0 }
 0x41a   :  { %v880_v56 = vsub.f32 1.0, %v879_v49  ;;  %vm898_vm9 = vweird.f32 %v1756_v0  ;;  %vm967_vm11 = vweird.f32 %v1752_v27  ;;  %vm971_vm2 = vcmp.eq.f32.partialorder %v970_v54, 8.507059e+37 }
 0x41b   :  { %v963_v6 = vsub.f32 1.0, %v962_v58  ;;  %v905_v4 = vor.u32 1.1754944e-38, %v904_v62  ;;  %vm903_vm14 = vcmp.eq.f32.partialorder %v902_v41, 8.507059e+37  ;;  %vm1809_vm0 = vmor %vm966_vm15, %vm967_vm11 }
 0x41c   :  { %v881_v61 = vmul.f32 %v1195_v44, %v880_v56 }
 0x41d   :  { %v964_v33 = vmul.f32 %v1752_v27, %v963_v6 }
 0x41e   :  { %v882_v3 = vadd.f32 %v1195_v44, %v881_v61 }
 0x41f   :  { %v1199_v7 = vpop.eup %1198  ;;  %v965_v49 = vadd.f32 %v1752_v27, %v964_v33 }
 0x420   :  { %v886_v19 = vsel %vm885_vm3, %v1195_v44, %v882_v3  ;;  %v894_v42 = vmul.f32 %v1199_v7, %v1756_v0  ;;  %v793_v20 = vpop.permute.xlu1 %792  ;;  %vm899_vm8 = vweird.f32 %v1199_v7  ;;  %v756_v44 = vmul.f32 %v755_v8, %v1594_v14 }
 0x421   :  { %v891_v24 = vsel %vm888_vm5, %v890_v15, %v886_v19  ;;  %1200 = vrcp.f32 %v793_v20  ;;  %vm900_vm13 = vmor %vm898_vm9, %vm899_vm8  ;;  %v972_v14 = vand.u32 2147483648, %v1704_v5  ;;  %v969_v48 = vsel %vm1809_vm0, %v1752_v27, %v965_v49 }
 0x422   :  { %v892_v25 = vmul.f32 %v891_v24, %v1604_v28  ;;  %v895_v12 = vsub.f32 1.0, %v894_v42  ;;  %v659_v28 = vsel %vm1794_vm7, %v1717_v18, %v655_v21  ;;  %v759_v0 = vmul.f32 %v757_v1, %v756_v44 }
 0x423   :  { %v664_v51 = vsel %vm661_vm10, %v663_v45, %v659_v28  ;;  %v821_v59 = vand.u32 2147483648, %v793_v20  ;;  %v819_v40 = vand.u32 2147483647, %v793_v20  ;;  %v973_v1 = vor.u32 1.1754944e-38, %v972_v14 }
 0x424   :  { %v896_v38 = vmul.f32 %v1199_v7, %v895_v12  ;;  %v909_v43 = vmul.f32 %v908_v36, %v892_v25  ;;  %v665_v58 = vmul.f32 %v664_v51, %v1592_v13  ;;  %v761_v60 = vadd.f32 %v759_v0, %v582_v55 }
 0x425   :  { %vm815_vm3 = vweird.f32 %v793_v20  ;;  %v974_v13 = vsel %vm971_vm2, %v973_v1, %v969_v48  ;;  %v822_v50 = vor.u32 1.1754944e-38, %v821_v59  ;;  %vm820_vm5 = vcmp.eq.f32.partialorder %v819_v40, 8.507059e+37 }
 0x426   :  { %v897_v46 = vadd.f32 %v1199_v7, %v896_v38  ;;  %v911_v29 = vadd.f32 %v909_v43, %v760_v37  ;;  %v668_v27 = vmul.f32 %v666_v17, %v665_v58  ;;  %v489_v8 = vmul.f32 %v487_v22, %v1544_v2  ;;  %v1153_v17 = vld [vmem:[%s1857_s17] ss:$0 sm:$0xff]  ;;  %s1245_s17 = smov 128  }
 0x427   :  { %v1201_v47 = vpop.eup %1200  ;;  %v975_v11 = vmul.f32 %v974_v13, %v1607_v30 }
 0x428   :  { %v811_v26 = vmul.f32 %v1201_v47, %v793_v20  ;;  %1125 = vmatmul.msk.f32.vlgmr.msrb.gmra.mxu2 %vm494_vm12, %v911_v29  ;;  %v901_v18 = vsel %vm900_vm13, %v1199_v7, %v897_v46  ;;  %vm816_vm1 = vweird.f32 %v1201_v47  ;;  %v670_v6 = vadd.f32 %v668_v27, %v489_v8 }
 0x429   :  { %v906_v52 = vsel %vm903_vm14, %v905_v4, %v901_v18  ;;  %vm817_vm4 = vmor %vm815_vm3, %vm816_vm1  ;;  %v978_v19 = vmul.f32 %v976_v39, %v975_v11 }
 0x42a   :  { %v812_v56 = vsub.f32 1.0, %v811_v26  ;;  %v907_v57 = vmul.f32 %v906_v52, %v1610_v32 }
 0x42c   :  { %v813_v61 = vmul.f32 %v1201_v47, %v812_v56  ;;  %v910_v63 = vmul.f32 %v908_v36, %v907_v57 }
 0x42e   :  { %v814_v5 = vadd.f32 %v1201_v47, %v813_v61  ;;  %v912_v32 = vadd.f32 %v910_v63, %v761_v60 }
 0x430   :  { %v818_v3 = vsel %vm817_vm4, %v1201_v47, %v814_v5  ;;  %1126 = vmatmul.msk.f32.gmra.mxu2 %vm494_vm12, %v912_v32 }
 0x431   :  { %v823_v10 = vsel %vm820_vm5, %v822_v50, %v818_v3 }
 0x432   :  { %v824_v7 = vmul.f32 %v823_v10, %v1613_v34 }
 0x434   :  { %v827_v15 = vmul.f32 %v825_v23, %v824_v7 }
 0x436   :  { %v829_v16 = vadd.f32 %v827_v15, %v670_v6 }
 0x438   :  { %v980_v42 = vadd.f32 %v978_v19, %v829_v16 }
 0x43a   :  { %1130 = vmatmul.msk.f32.gmra.mxu0 %vm494_vm12, %v980_v42 }
 0x487   :  { %v1044_v2 = vpop.f32.mrf.mxu0 }
 0x4ab   :  { %v1007_v20 = vpop.f32.mrf.mxu2 }
 0x4ac   :  { %v1016_v21 = vadd.f32 %v1153_v17, %v1007_v20 }
 0x4ae   :  { %v1050_v22 = vadd.f32 %v1044_v2, %v1016_v21 }
 0x4b0   :  { %1052 = vst.msk [vmem:[#allocation5] sm:$0xff] %vm494_vm12, %v1050_v22 }
 0x4b3   :  { %v1010_v30 = vpop.f32.mrf.mxu2 }
 0x4b4   :  { %v1017_v34 = vadd.f32 %v1153_v17, %v1010_v30 }
 0x4b7   :  { %v1047_v23 = vpop.f32.mrf.mxu0 }
 0x4b8   :  { %v1051_v39 = vadd.f32 %v1047_v23, %v1017_v34 }
 0x4ba   :  { %1053 = vst.msk [vmem:[#allocation5 + $0x8] sm:$0xff] %vm494_vm12, %v1051_v39 }
 0x4bb   :  { %1066 = dma.vmem_to_hbm [thread:$0]  %s1059_s1, 256, %s1061_s22, [#allocation3], %s1245_s17, %s1245_s17, %s1246_s13  }
 0x4bc   :  { %1240 = dma.done.wait [#allocation3], 256  }
 0x4bd   :  { %1241 = vsyncadd [#allocation3], 4294967040 }
 0x4be   :  { %1071 = vsyncpa [#allocation3], 1 }
 0x4bf   :  { %1072 = vsyncpa [#allocation4], 1 }

</bundles_post_ra>
